<compile_context>
chip_gen: v7x
topology: tpu7x:2x2x1
jax: 0.10.0
libtpu: 0.0.40
codegen_flags: <defaults>
</compile_context>

<pallas_src>
import functools

import jax
import jax.numpy as jnp
from jax.experimental import pallas as pl
from jax.experimental.pallas import tpu as pltpu


def _round_up(v, m):
    return ((v + m - 1) // m) * m


def _vmem_limit_bytes():
    """Scoped-VMEM limit to request: ~3/4 of physical, capped at 64 MiB."""
    try:
        cap = int(pltpu.get_tpu_info().vmem_capacity_bytes)
    except Exception:
        cap = 64 * 1024 * 1024          # conservative (v7x physical)
    return min((cap * 3) // 4, 64 * 1024 * 1024)


# ----------------------------------------------------------------------------
# Resident single-pass kernel: grid = (num_cblocks,) ["parallel" for v7x].
# The whole (padded) node axis is one block; x is read from HBM exactly once.
# ----------------------------------------------------------------------------
def _bn_resident_kernel(eps, inv_n, x_ref, gamma_ref, beta_ref,
                        y_ref, mean_ref, var_ref):
    x = x_ref[...].astype(jnp.float32)                         # [N_pad, CB]
    s = jnp.sum(x, axis=0, keepdims=True)                      # [1, CB]
    sq = jnp.sum(x * x, axis=0, keepdims=True)                 # [1, CB]
    mean = s * inv_n
    var = jnp.maximum(sq * inv_n - mean * mean, 0.0)           # clamp cancellation
    inv_std = jax.lax.rsqrt(var + eps)                         # EUP slot
    scale = gamma_ref[...] * inv_std
    shift = beta_ref[...] - mean * scale
    y_ref[...] = (x * scale + shift).astype(y_ref.dtype)       # lane-dense store
    mean_ref[...] = mean
    var_ref[...] = var


# ----------------------------------------------------------------------------
# Tiled two-phase kernel: grid = (num_cblocks, 2 phases, num_row_tiles).
#   phase 0: accumulate per-feature sum(x), sum(x^2) into VMEM scratch
#   phase 1: tile 0 finalizes stats -> scratch becomes (scale, shift);
#            every tile then does only x*scale + shift.
# ----------------------------------------------------------------------------
def _bn_tiled_kernel(eps, inv_n, x_ref, gamma_ref, beta_ref,
                     y_ref, mean_ref, var_ref, sum_ref, sq_ref):
    phase = pl.program_id(1)
    tile = pl.program_id(2)

    @pl.when(phase == 0)
    def _accumulate():
        @pl.when(tile == 0)
        def _init():
            sum_ref[...] = jnp.zeros_like(sum_ref)
            sq_ref[...] = jnp.zeros_like(sq_ref)

        x = x_ref[...].astype(jnp.float32)                     # [TN, CB]
        sum_ref[...] += jnp.sum(x, axis=0, keepdims=True)
        sq_ref[...] += jnp.sum(x * x, axis=0, keepdims=True)

    @pl.when(phase == 1)
    def _normalize():
        @pl.when(tile == 0)
        def _finalize_stats():
            mean = sum_ref[...] * inv_n
            var = jnp.maximum(sq_ref[...] * inv_n - mean * mean, 0.0)
            inv_std = jax.lax.rsqrt(var + eps)
            scale = gamma_ref[...] * inv_std
            shift = beta_ref[...] - mean * scale
            mean_ref[...] = mean
            var_ref[...] = var
            sum_ref[...] = scale        # scratch now holds scale
            sq_ref[...] = shift         # scratch now holds shift

        x = x_ref[...].astype(jnp.float32)
        y_ref[...] = (x * sum_ref[...] + sq_ref[...]).astype(y_ref.dtype)


# ----------------------------------------------------------------------------
# Wrapper: returns (y, new_running_mean, new_running_var).
# ----------------------------------------------------------------------------
def batchnorm1d_node_forward(x, gamma, beta, running_mean, running_var,
                             *, eps=1e-5, momentum=0.1,
                             _force_tiled=False, _block_budget_bytes=None):
    # TODO(synk): eval-mode branch (normalize with running statistics) is not
    # implemented; this covers the default training-mode forward of BatchNorm1d.
    n, c = x.shape
    itemsize = x.dtype.itemsize
    vmem_limit = _vmem_limit_bytes()

    # Channel padding (lane-dense stores) and channel blocking (v7x 2nd core).
    c_pad = _round_up(c, 128)
    num_cblocks = 2 if (c_pad >= 256 and c_pad % 256 == 0) else 1
    c_block = c_pad // num_cblocks

    n8 = _round_up(n, 8)

    # Resident single-pass fast path if the working set fits scoped VMEM.
    buf_factor = 2 if num_cblocks > 1 else 1
    resident_bytes = n8 * c_block * (2 * itemsize * buf_factor + 8)
    use_resident = (not _force_tiled) and resident_bytes <= (vmem_limit * 9) // 10

    if use_resident:
        n_pad = n8
        tn = n_pad
        num_tiles = 1
    else:
        budget = _block_budget_bytes
        if budget is None:
            budget = min(8 * 1024 * 1024, vmem_limit // 6)
        tn = max(8, (budget // (c_block * itemsize)) // 8 * 8)
        tn = min(tn, n8)
        n_pad = _round_up(n, tn)
        num_tiles = n_pad // tn

    # Pad inputs. Zero rows/columns contribute 0 to the sums and inv_n uses the
    # true n, so padding never changes the statistics of real channels.
    x_work = x
    if (n_pad, c_pad) != (n, c):
        x_work = jnp.pad(x, ((0, n_pad - n), (0, c_pad - c)))
    gamma2 = jnp.pad(gamma.astype(jnp.float32), (0, c_pad - c),
                     constant_values=1.0).reshape(1, c_pad)
    beta2 = jnp.pad(beta.astype(jnp.float32), (0, c_pad - c)).reshape(1, c_pad)

    out_shape = (
        jax.ShapeDtypeStruct((n_pad, c_pad), x.dtype),      # normalized features
        jax.ShapeDtypeStruct((1, c_pad), jnp.float32),      # batch mean
        jax.ShapeDtypeStruct((1, c_pad), jnp.float32),      # batch var (biased)
    )

    if use_resident:
        y_pad, mean_pad, var_pad = pl.pallas_call(
            functools.partial(_bn_resident_kernel, float(eps), 1.0 / n),
            out_shape=out_shape,
            grid=(num_cblocks,),
            in_specs=[
                pl.BlockSpec((n_pad, c_block), lambda cb: (0, cb)),
                pl.BlockSpec((1, c_block), lambda cb: (0, cb)),
                pl.BlockSpec((1, c_block), lambda cb: (0, cb)),
            ],
            out_specs=(
                pl.BlockSpec((n_pad, c_block), lambda cb: (0, cb)),
                pl.BlockSpec((1, c_block), lambda cb: (0, cb)),
                pl.BlockSpec((1, c_block), lambda cb: (0, cb)),
            ),
            compiler_params=pltpu.CompilerParams(
                dimension_semantics=("parallel",),
                vmem_limit_bytes=vmem_limit),
        )(x_work, gamma2, beta2)
    else:
        y_pad, mean_pad, var_pad = pl.pallas_call(
            functools.partial(_bn_tiled_kernel, float(eps), 1.0 / n),
            out_shape=out_shape,
            grid=(num_cblocks, 2, num_tiles),
            in_specs=[
                pl.BlockSpec((tn, c_block), lambda cb, p, t: (t, cb)),
                pl.BlockSpec((1, c_block), lambda cb, p, t: (0, cb)),
                pl.BlockSpec((1, c_block), lambda cb, p, t: (0, cb)),
            ],
            out_specs=(
                # (t * p, cb): the y row-block index is pinned to 0 during the
                # reduction phase, so each output tile is DMA'd to HBM exactly
                # once, after phase 1 has written real values into it.
                pl.BlockSpec((tn, c_block), lambda cb, p, t: (t * p, cb)),
                pl.BlockSpec((1, c_block), lambda cb, p, t: (0, cb)),
                pl.BlockSpec((1, c_block), lambda cb, p, t: (0, cb)),
            ),
            scratch_shapes=[
                pltpu.VMEM((1, c_block), jnp.float32),   # sum(x)   -> scale
                pltpu.VMEM((1, c_block), jnp.float32),   # sum(x^2) -> shift
            ],
            compiler_params=pltpu.CompilerParams(
                # channel blocks are independent -> parallel (v7x megacore);
                # phase and row-tile axes carry the scratch accumulation.
                dimension_semantics=("parallel", "arbitrary", "arbitrary"),
                vmem_limit_bytes=vmem_limit),
        )(x_work, gamma2, beta2)

    y = y_pad[:n, :c]
    batch_mean = mean_pad[0, :c]
    batch_var = var_pad[0, :c]
    # PyTorch running_var uses the unbiased estimate (n==1 would error in torch).
    unbiased_var = batch_var * (n / max(n - 1, 1))
    new_running_mean = (1.0 - momentum) * running_mean + momentum * batch_mean
    new_running_var = (1.0 - momentum) * running_var + momentum * unbiased_var
    return y, new_running_mean, new_running_var


# ----------------------------------------------------------------------------
# Self-test
# ----------------------------------------------------------------------------
if __name__ == "__main__":
    EPS, MOM = 1e-5, 0.1        # stand-ins for cfg.bn.eps / cfg.bn.mom (defaults)

    def torch_bn_ref(x, gamma, beta, rm, rv):
        mean = x.mean(axis=0)
        var_b = x.var(axis=0)                       # biased, for normalization
        var_u = x.var(axis=0, ddof=1)               # unbiased, for running stats
        y = (x - mean) / jnp.sqrt(var_b + EPS) * gamma + beta
        return (y,
                (1.0 - MOM) * rm + MOM * mean,
                (1.0 - MOM) * rv + MOM * var_u)

    key = jax.random.PRNGKey(0)
    tests = [
        # (N, C, force_tiled, block_budget) -- small shapes
        (1024, 128, False, None),       # resident single-pass fast path
        (300, 200, True, 64 * 1024),    # tiled two-phase path: padded N and C,
                                        # 2 channel blocks, multi-tile reduction
    ]

    for idx, (N, C, force_tiled, budget) in enumerate(tests):
        k1, k2, k3, key = jax.random.split(key, 4)
        x = jax.random.normal(k1, (N, C), jnp.float32) * 1.5 + 0.3
        gamma = 1.0 + 0.1 * jax.random.normal(k2, (C,), jnp.float32)
        beta = 0.1 * jax.random.normal(k3, (C,), jnp.float32)
        running_mean = jnp.zeros((C,), jnp.float32)
        running_var = jnp.ones((C,), jnp.float32)

        y, rm, rv = batchnorm1d_node_forward(
            x, gamma, beta, running_mean, running_var,
            eps=EPS, momentum=MOM,
            _force_tiled=force_tiled, _block_budget_bytes=budget)
        y = jax.block_until_ready(y)

        y_ref, rm_ref, rv_ref = torch_bn_ref(x, gamma, beta,
                                             running_mean, running_var)

        assert y.shape == (N, C), (idx, y.shape)
        assert bool(jnp.all(jnp.isfinite(y))), idx
        assert bool(jnp.allclose(y, y_ref, rtol=1e-4, atol=1e-4)), \
            (idx, float(jnp.max(jnp.abs(y - y_ref))))
        assert bool(jnp.allclose(rm, rm_ref, rtol=1e-4, atol=1e-4)), idx
        assert bool(jnp.allclose(rv, rv_ref, rtol=1e-4, atol=1e-4)), idx

    print("KERNEL_OK")
</pallas_src>

<mosaic_0001>
module attributes {stable_mosaic.version = 11 : i64} {
  func.func @_bn_resident_kernel(%arg0: i32, %arg1: memref<1024x128xf32, #tpu.memory_space<vmem>>, %arg2: memref<1x128xf32, #tpu.memory_space<vmem>>, %arg3: memref<1x128xf32, #tpu.memory_space<vmem>>, %arg4: memref<1024x128xf32, #tpu.memory_space<vmem>>, %arg5: memref<1x128xf32, #tpu.memory_space<vmem>>, %arg6: memref<1x128xf32, #tpu.memory_space<vmem>>) attributes {dimension_semantics = [#tpu.dimension_semantics<parallel>], iteration_bounds = array<i64: 1>, scalar_prefetch = 0 : i64, scratch_operands = 0 : i64, tpu.core_type = #tpu.core_type<tc>, window_params = [{transform_indices = @transform_0, window_bounds = array<i64: 1024, 128>}, {transform_indices = @transform_1, window_bounds = array<i64: 1, 128>}, {transform_indices = @transform_2, window_bounds = array<i64: 1, 128>}, {transform_indices = @transform_3, window_bounds = array<i64: 1024, 128>}, {transform_indices = @transform_4, window_bounds = array<i64: 1, 128>}, {transform_indices = @transform_5, window_bounds = array<i64: 1, 128>}]} {
    %c0 = arith.constant 0 : index
    %c0_0 = arith.constant 0 : index
    %0 = vector.load %arg1[%c0, %c0_0] : memref<1024x128xf32, #tpu.memory_space<vmem>>, vector<1024x128xf32>
    %cst = arith.constant dense<0.000000e+00> : vector<128xf32>
    %1 = vector.multi_reduction <add>, %0, %cst [0] : vector<1024x128xf32> to vector<128xf32>
    %2 = vector.shape_cast %1 : vector<128xf32> to vector<1x128xf32>
    %3 = arith.mulf %0, %0 : vector<1024x128xf32>
    %cst_1 = arith.constant dense<0.000000e+00> : vector<128xf32>
    %4 = vector.multi_reduction <add>, %3, %cst_1 [0] : vector<1024x128xf32> to vector<128xf32>
    %5 = vector.shape_cast %4 : vector<128xf32> to vector<1x128xf32>
    %cst_2 = arith.constant 9.765625E-4 : f32
    %6 = vector.broadcast %cst_2 : f32 to vector<1x128xf32>
    %7 = arith.mulf %2, %6 : vector<1x128xf32>
    %cst_3 = arith.constant 9.765625E-4 : f32
    %8 = vector.broadcast %cst_3 : f32 to vector<1x128xf32>
    %9 = arith.mulf %5, %8 : vector<1x128xf32>
    %10 = arith.mulf %7, %7 : vector<1x128xf32>
    %11 = arith.subf %9, %10 : vector<1x128xf32>
    %cst_4 = arith.constant 0.000000e+00 : f32
    %12 = vector.broadcast %cst_4 : f32 to vector<1x128xf32>
    %13 = arith.maximumf %11, %12 : vector<1x128xf32>
    %cst_5 = arith.constant 9.99999974E-6 : f32
    %14 = vector.broadcast %cst_5 : f32 to vector<1x128xf32>
    %15 = arith.addf %13, %14 : vector<1x128xf32>
    %16 = math.rsqrt %15 : vector<1x128xf32>
    %c0_6 = arith.constant 0 : index
    %c0_7 = arith.constant 0 : index
    %17 = vector.load %arg2[%c0_6, %c0_7] : memref<1x128xf32, #tpu.memory_space<vmem>>, vector<1x128xf32>
    %18 = arith.mulf %17, %16 : vector<1x128xf32>
    %c0_8 = arith.constant 0 : index
    %c0_9 = arith.constant 0 : index
    %19 = vector.load %arg3[%c0_8, %c0_9] : memref<1x128xf32, #tpu.memory_space<vmem>>, vector<1x128xf32>
    %20 = arith.mulf %7, %18 : vector<1x128xf32>
    %21 = arith.subf %19, %20 : vector<1x128xf32>
    %22 = vector.broadcast %18 : vector<1x128xf32> to vector<1024x128xf32>
    %23 = arith.mulf %0, %22 : vector<1024x128xf32>
    %24 = vector.broadcast %21 : vector<1x128xf32> to vector<1024x128xf32>
    %25 = arith.addf %23, %24 : vector<1024x128xf32>
    %c0_10 = arith.constant 0 : index
    %c0_11 = arith.constant 0 : index
    %26 = vector.load %arg4[%c0_10, %c0_11] : memref<1024x128xf32, #tpu.memory_space<vmem>>, vector<1024x128xf32>
    tpu.vector_store %arg4[%c0_10, %c0_11], %25 {strides = array<i32>} : memref<1024x128xf32, #tpu.memory_space<vmem>>, vector<1024x128xf32>,
    %c0_12 = arith.constant 0 : index
    %c0_13 = arith.constant 0 : index
    %27 = vector.load %arg5[%c0_12, %c0_13] : memref<1x128xf32, #tpu.memory_space<vmem>>, vector<1x128xf32>
    tpu.vector_store %arg5[%c0_12, %c0_13], %7 {strides = array<i32>} : memref<1x128xf32, #tpu.memory_space<vmem>>, vector<1x128xf32>,
    %c0_14 = arith.constant 0 : index
    %c0_15 = arith.constant 0 : index
    %28 = vector.load %arg6[%c0_14, %c0_15] : memref<1x128xf32, #tpu.memory_space<vmem>>, vector<1x128xf32>
    tpu.vector_store %arg6[%c0_14, %c0_15], %13 {strides = array<i32>} : memref<1x128xf32, #tpu.memory_space<vmem>>, vector<1x128xf32>,
    return
  }
  func.func @transform_0(%arg0: i32) -> (i32, i32) {
    %c0_i32 = arith.constant 0 : i32
    %c0_i32_0 = arith.constant 0 : i32
    return %c0_i32, %arg0 : i32, i32
  }
  func.func @transform_1(%arg0: i32) -> (i32, i32) {
    %c0_i32 = arith.constant 0 : i32
    %c0_i32_0 = arith.constant 0 : i32
    return %c0_i32, %arg0 : i32, i32
  }
  func.func @transform_2(%arg0: i32) -> (i32, i32) {
    %c0_i32 = arith.constant 0 : i32
    %c0_i32_0 = arith.constant 0 : i32
    return %c0_i32, %arg0 : i32, i32
  }
  func.func @transform_3(%arg0: i32) -> (i32, i32) {
    %c0_i32 = arith.constant 0 : i32
    %c0_i32_0 = arith.constant 0 : i32
    return %c0_i32, %arg0 : i32, i32
  }
  func.func @transform_4(%arg0: i32) -> (i32, i32) {
    %c0_i32 = arith.constant 0 : i32
    %c0_i32_0 = arith.constant 0 : i32
    return %c0_i32, %arg0 : i32, i32
  }
  func.func @transform_5(%arg0: i32) -> (i32, i32) {
    %c0_i32 = arith.constant 0 : i32
    %c0_i32_0 = arith.constant 0 : i32
    return %c0_i32, %arg0 : i32, i32
  }
}

</mosaic_0001>

<bundles_post_ra>
// kernel: tpu_custom_call.1
= control target key start
LH: loop header
LB: loop body
LE: loop exit
PB: predicated region body
PF: predicated region fallthrough
CT: control target
= control target key end

     0   :  { %11 = vsyncpa [#allocation3], 0  ;;  %s2045_s0 = inlined_call_operand.hbm [shape: f32[1024,128], index: 0, kind: input, shape index: {}]   ;;  %s2046_s1 = inlined_call_operand.vmem [shape: f32[1,128], index: 1, kind: input, shape index: {}]   ;;  %s2047_s2 = inlined_call_operand.vmem [shape: f32[1,128], index: 2, kind: input, shape index: {}]   ;;  %s2048_s3 = inlined_call_operand.hbm [shape: f32[1024,128], index: 3, kind: output, shape index: {0}]   ;;  %s2049_s4 = inlined_call_operand.hbm [shape: f32[1,128], index: 4, kind: output, shape index: {1}]   ;;  %s2050_s5 = inlined_call_operand.hbm [shape: f32[1,128], index: 5, kind: output, shape index: {2}]  }
   0x1   :  { %12 = vsyncpa [#allocation4], 0 }
   0x2   :  { %13 = vsyncpa [#allocation7], 0  ;;  %s1149_s18 = smov [#allocation2]   ;;  %s1055_s22 = scalar_lea.hbm %s2045_s0, 16384 }
   0x3   :  { %s19_s19 = sshll.u32 %s1149_s18, 4  ;;  %p1056_p0 = scmp.ne.s32.totalorder %s2045_s0, %s1055_s22  ;;  %s20_s19 = int_to_ptr.vmem [resolvable:$true] %s19_s19 }
   0x4   :  { %p1059_p1 = scmp.lt.u32.totalorder %s1055_s22, %s2045_s0 }
   0x6   :  { %p1061_p2 = pnand %p1059_p1, %p1056_p0 }
   0x8   :  { %1064 = shalt.err (!%p1061_p2)
}
   0x9   :  { %s1065_s27 = scalar_lea.vmem %s20_s19, 16384  ;;  %p1070_p4 = scmp.lt.s32.totalorder %s20_s19, %s20_s19 }
   0xa   :  { %p1066_p3 = scmp.ne.s32.totalorder %s20_s19, %s1065_s27  ;;  %p1071_p5 = scmp.lt.s32.totalorder %s1065_s27, %s1065_s27 }
   0xc   :  { %p1072_p6 = por %p1071_p5, %p1070_p4 }
   0xe   :  { %p1073_p7 = pnand %p1072_p6, %p1066_p3 }
  0x10   :  { %1076 = shalt.err (!%p1073_p7)
}
  0x11   :  { %s1150_s28 = smov 128   ;;  %s1151_s29 = smov 8  }
  0x12   :  { %25 = dma.hbm_to_vmem [thread:$0]  %s2045_s0, 16384, %s20_s19, [#allocation3], %s1150_s28, %s1150_s28, %s1151_s29  }
  0x13   :  { %1143 = dma.done.wait [#allocation3], 16384  }
  0x14   :  { %1144 = vsyncadd [#allocation3], 4294950912  ;;  %v33_v0 = vld [vmem:[#allocation2] sm:$0xff]  ;;  %v34_v1 = vld [vmem:[#allocation2 + $0x8] sm:$0xff]  ;;  %s1152_s0 = smov [#allocation6]  }
  0x15   :  { %v35_v2 = vld [vmem:[#allocation2 + $0x10] sm:$0xff]  ;;  %v36_v3 = vld [vmem:[#allocation2 + $0x18] sm:$0xff]  ;;  %v161_v4 = vadd.f32 %v34_v1, %v33_v0  ;;  %v294_v5 = vmul.f32 %v33_v0, %v33_v0  ;;  %v295_v6 = vmul.f32 %v34_v1, %v34_v1  ;;  %v37_v8 = vld [vmem:[#allocation2 + $0x20] sm:$0xff]  ;;  %s983_s7 = sshll.u32 %s1152_s0, 4  ;;  %s984_s7 = int_to_ptr.vmem [resolvable:$true] %s983_s7 }
  0x16   :  { %v296_v7 = vmul.f32 %v35_v2, %v35_v2  ;;  %v297_v10 = vmul.f32 %v36_v3, %v36_v3  ;;  %v38_v12 = vld [vmem:[#allocation2 + $0x28] sm:$0xff]  ;;  %v298_v14 = vmul.f32 %v37_v8, %v37_v8  ;;  %v39_v16 = vld [vmem:[#allocation2 + $0x30] sm:$0xff]  ;;  %v40_v20 = vld [vmem:[#allocation2 + $0x38] sm:$0xff]  ;;  %s1077_s8 = scalar_lea.vmem %s984_s7, 16  ;;  %s1081_s9 = scalar_lea.vmem %s984_s7, 32 }
  0x17   :  { %v162_v9 = vadd.f32 %v161_v4, %v35_v2  ;;  %v422_v11 = vadd.f32 %v295_v6, %v294_v5  ;;  %v299_v18 = vmul.f32 %v38_v12, %v38_v12  ;;  %v300_v22 = vmul.f32 %v39_v16, %v39_v16  ;;  %v41_v24 = vld [vmem:[#allocation2 + $0x40] sm:$0xff]  ;;  %v42_v28 = vld [vmem:[#allocation2 + $0x48] sm:$0xff]  ;;  %v43_v32 = vld [vmem:[#allocation2 + $0x50] sm:$0xff]  ;;  %p1078_p8 = scmp.ne.s32.totalorder %s984_s7, %s1077_s8  ;;  %p1082_p9 = scmp.lt.s32.totalorder %s984_s7, %s984_s7 }
  0x18   :  { %v301_v26 = vmul.f32 %v40_v20, %v40_v20  ;;  %v302_v30 = vmul.f32 %v41_v24, %v41_v24  ;;  %v303_v34 = vmul.f32 %v42_v28, %v42_v28  ;;  %v44_v36 = vld [vmem:[#allocation2 + $0x58] sm:$0xff]  ;;  %v304_v38 = vmul.f32 %v43_v32, %v43_v32  ;;  %v45_v40 = vld [vmem:[#allocation2 + $0x60] sm:$0xff]  ;;  %v46_v44 = vld [vmem:[#allocation2 + $0x68] sm:$0xff]  ;;  %p1083_p10 = scmp.lt.s32.totalorder %s1081_s9, %s1077_s8 }
  0x19   :  { %v163_v13 = vadd.f32 %v162_v9, %v36_v3  ;;  %v423_v15 = vadd.f32 %v422_v11, %v296_v7  ;;  %v305_v42 = vmul.f32 %v44_v36, %v44_v36  ;;  %v306_v46 = vmul.f32 %v45_v40, %v45_v40  ;;  %v47_v48 = vld [vmem:[#allocation2 + $0x70] sm:$0xff]  ;;  %v48_v52 = vld [vmem:[#allocation2 + $0x78] sm:$0xff]  ;;  %v49_v56 = vld [vmem:[#allocation2 + $0x80] sm:$0xff] }
  0x1a   :  { %v307_v50 = vmul.f32 %v46_v44, %v46_v44  ;;  %v308_v54 = vmul.f32 %v47_v48, %v47_v48  ;;  %v309_v58 = vmul.f32 %v48_v52, %v48_v52  ;;  %v50_v60 = vld [vmem:[#allocation2 + $0x88] sm:$0xff]  ;;  %v310_v62 = vmul.f32 %v49_v56, %v49_v56  ;;  %v51_v0 = vld [vmem:[#allocation2 + $0x90] sm:$0xff]  ;;  %v52_v4 = vld [vmem:[#allocation2 + $0x98] sm:$0xff]  ;;  %p1084_p11 = por %p1083_p10, %p1082_p9 }
  0x1b   :  { %v164_v17 = vadd.f32 %v163_v13, %v37_v8  ;;  %v424_v19 = vadd.f32 %v423_v15, %v297_v10  ;;  %v311_v2 = vmul.f32 %v50_v60, %v50_v60  ;;  %v312_v6 = vmul.f32 %v51_v0, %v51_v0  ;;  %v53_v8 = vld [vmem:[#allocation2 + $0xa0] sm:$0xff] }
  0x1c   :  { %v313_v10 = vmul.f32 %v52_v4, %v52_v4  ;;  %p1085_p12 = pnand %p1084_p11, %p1078_p8 }
  0x1d   :  { %v165_v21 = vadd.f32 %v164_v17, %v38_v12  ;;  %v425_v23 = vadd.f32 %v424_v19, %v298_v14  ;;  %v54_v12 = vld [vmem:[#allocation2 + $0xa8] sm:$0xff]  ;;  %v314_v14 = vmul.f32 %v53_v8, %v53_v8 }
  0x1f   :  { %v166_v25 = vadd.f32 %v165_v21, %v39_v16  ;;  %v426_v27 = vadd.f32 %v425_v23, %v299_v18  ;;  %v55_v16 = vld [vmem:[#allocation2 + $0xb0] sm:$0xff]  ;;  %v315_v18 = vmul.f32 %v54_v12, %v54_v12 }
  0x21   :  { %v167_v29 = vadd.f32 %v166_v25, %v40_v20  ;;  %v427_v31 = vadd.f32 %v426_v27, %v300_v22  ;;  %v56_v20 = vld [vmem:[#allocation2 + $0xb8] sm:$0xff]  ;;  %v316_v22 = vmul.f32 %v55_v16, %v55_v16 }
  0x23   :  { %v168_v33 = vadd.f32 %v167_v29, %v41_v24  ;;  %v428_v35 = vadd.f32 %v427_v31, %v301_v26  ;;  %v57_v24 = vld [vmem:[#allocation2 + $0xc0] sm:$0xff]  ;;  %v317_v26 = vmul.f32 %v56_v20, %v56_v20 }
  0x25   :  { %v169_v37 = vadd.f32 %v168_v33, %v42_v28  ;;  %v429_v39 = vadd.f32 %v428_v35, %v302_v30  ;;  %v58_v28 = vld [vmem:[#allocation2 + $0xc8] sm:$0xff]  ;;  %v318_v30 = vmul.f32 %v57_v24, %v57_v24 }
  0x27   :  { %v170_v41 = vadd.f32 %v169_v37, %v43_v32  ;;  %v430_v43 = vadd.f32 %v429_v39, %v303_v34  ;;  %v59_v32 = vld [vmem:[#allocation2 + $0xd0] sm:$0xff]  ;;  %v319_v34 = vmul.f32 %v58_v28, %v58_v28 }
  0x29   :  { %v171_v45 = vadd.f32 %v170_v41, %v44_v36  ;;  %v431_v47 = vadd.f32 %v430_v43, %v304_v38  ;;  %v60_v36 = vld [vmem:[#allocation2 + $0xd8] sm:$0xff]  ;;  %v320_v38 = vmul.f32 %v59_v32, %v59_v32 }
  0x2b   :  { %v172_v49 = vadd.f32 %v171_v45, %v45_v40  ;;  %v432_v51 = vadd.f32 %v431_v47, %v305_v42  ;;  %v61_v40 = vld [vmem:[#allocation2 + $0xe0] sm:$0xff]  ;;  %v321_v42 = vmul.f32 %v60_v36, %v60_v36 }
  0x2d   :  { %v173_v53 = vadd.f32 %v172_v49, %v46_v44  ;;  %v433_v55 = vadd.f32 %v432_v51, %v306_v46  ;;  %v62_v44 = vld [vmem:[#allocation2 + $0xe8] sm:$0xff]  ;;  %v322_v46 = vmul.f32 %v61_v40, %v61_v40 }
  0x2f   :  { %v174_v57 = vadd.f32 %v173_v53, %v47_v48  ;;  %v434_v59 = vadd.f32 %v433_v55, %v307_v50  ;;  %v63_v48 = vld [vmem:[#allocation2 + $0xf0] sm:$0xff]  ;;  %v323_v50 = vmul.f32 %v62_v44, %v62_v44 }
  0x31   :  { %v175_v61 = vadd.f32 %v174_v57, %v48_v52  ;;  %v435_v63 = vadd.f32 %v434_v59, %v308_v54  ;;  %v64_v52 = vld [vmem:[#allocation2 + $0xf8] sm:$0xff]  ;;  %v324_v54 = vmul.f32 %v63_v48, %v63_v48 }
  0x33   :  { %v176_v1 = vadd.f32 %v175_v61, %v49_v56  ;;  %v436_v3 = vadd.f32 %v435_v63, %v309_v58  ;;  %v65_v56 = vld [vmem:[#allocation2 + $0x100] sm:$0xff]  ;;  %v325_v58 = vmul.f32 %v64_v52, %v64_v52 }
  0x35   :  { %v177_v5 = vadd.f32 %v176_v1, %v50_v60  ;;  %v437_v7 = vadd.f32 %v436_v3, %v310_v62  ;;  %v66_v60 = vld [vmem:[#allocation2 + $0x108] sm:$0xff]  ;;  %v326_v62 = vmul.f32 %v65_v56, %v65_v56 }
  0x37   :  { %v178_v9 = vadd.f32 %v177_v5, %v51_v0  ;;  %v438_v11 = vadd.f32 %v437_v7, %v311_v2  ;;  %v67_v0 = vld [vmem:[#allocation2 + $0x110] sm:$0xff]  ;;  %v327_v2 = vmul.f32 %v66_v60, %v66_v60 }
  0x39   :  { %v179_v13 = vadd.f32 %v178_v9, %v52_v4  ;;  %v439_v15 = vadd.f32 %v438_v11, %v312_v6  ;;  %v1200_v4 = vld [vmem:[#allocation2 + $0x118] sm:$0xff]  ;;  %v328_v6 = vmul.f32 %v67_v0, %v67_v0 }
  0x3b   :  { %v180_v17 = vadd.f32 %v179_v13, %v53_v8  ;;  %v440_v19 = vadd.f32 %v439_v15, %v313_v10  ;;  %v69_v8 = vld [vmem:[#allocation2 + $0x120] sm:$0xff]  ;;  %v329_v10 = vmul.f32 %v1200_v4, %v1200_v4 }
  0x3d   :  { %v181_v21 = vadd.f32 %v180_v17, %v54_v12  ;;  %v441_v23 = vadd.f32 %v440_v19, %v314_v14  ;;  %v1204_v12 = vld [vmem:[#allocation2 + $0x128] sm:$0xff]  ;;  %v330_v14 = vmul.f32 %v69_v8, %v69_v8 }
  0x3f   :  { %v182_v25 = vadd.f32 %v181_v21, %v55_v16  ;;  %v442_v27 = vadd.f32 %v441_v23, %v315_v18  ;;  %v71_v16 = vld [vmem:[#allocation2 + $0x130] sm:$0xff]  ;;  %v331_v18 = vmul.f32 %v1204_v12, %v1204_v12 }
  0x41   :  { %v183_v29 = vadd.f32 %v182_v25, %v56_v20  ;;  %v443_v31 = vadd.f32 %v442_v27, %v316_v22  ;;  %v1209_v20 = vld [vmem:[#allocation2 + $0x138] sm:$0xff]  ;;  %v332_v22 = vmul.f32 %v71_v16, %v71_v16 }
  0x43   :  { %v184_v33 = vadd.f32 %v183_v29, %v57_v24  ;;  %v444_v35 = vadd.f32 %v443_v31, %v317_v26  ;;  %v73_v24 = vld [vmem:[#allocation2 + $0x140] sm:$0xff]  ;;  %v333_v26 = vmul.f32 %v1209_v20, %v1209_v20 }
  0x45   :  { %v185_v37 = vadd.f32 %v184_v33, %v58_v28  ;;  %v445_v39 = vadd.f32 %v444_v35, %v318_v30  ;;  %v1214_v28 = vld [vmem:[#allocation2 + $0x148] sm:$0xff]  ;;  %v334_v30 = vmul.f32 %v73_v24, %v73_v24 }
  0x47   :  { %v186_v41 = vadd.f32 %v185_v37, %v59_v32  ;;  %v446_v43 = vadd.f32 %v445_v39, %v319_v34  ;;  %v1217_v32 = vld [vmem:[#allocation2 + $0x150] sm:$0xff]  ;;  %v335_v34 = vmul.f32 %v1214_v28, %v1214_v28 }
  0x49   :  { %v187_v45 = vadd.f32 %v186_v41, %v60_v36  ;;  %v447_v47 = vadd.f32 %v446_v43, %v320_v38  ;;  %v1221_v36 = vld [vmem:[#allocation2 + $0x158] sm:$0xff]  ;;  %v336_v38 = vmul.f32 %v1217_v32, %v1217_v32 }
  0x4b   :  { %v188_v49 = vadd.f32 %v187_v45, %v61_v40  ;;  %v448_v51 = vadd.f32 %v447_v47, %v321_v42  ;;  %v1226_v40 = vld [vmem:[#allocation2 + $0x160] sm:$0xff]  ;;  %v337_v42 = vmul.f32 %v1221_v36, %v1221_v36 }
  0x4d   :  { %v189_v53 = vadd.f32 %v188_v49, %v62_v44  ;;  %v449_v55 = vadd.f32 %v448_v51, %v322_v46  ;;  %v1231_v44 = vld [vmem:[#allocation2 + $0x168] sm:$0xff]  ;;  %v338_v46 = vmul.f32 %v1226_v40, %v1226_v40 }
  0x4f   :  { %v190_v57 = vadd.f32 %v189_v53, %v63_v48  ;;  %v450_v59 = vadd.f32 %v449_v55, %v323_v50  ;;  %v1236_v48 = vld [vmem:[#allocation2 + $0x170] sm:$0xff]  ;;  %v339_v50 = vmul.f32 %v1231_v44, %v1231_v44 }
  0x51   :  { %v191_v61 = vadd.f32 %v190_v57, %v64_v52  ;;  %v451_v63 = vadd.f32 %v450_v59, %v324_v54  ;;  %v1241_v52 = vld [vmem:[#allocation2 + $0x178] sm:$0xff]  ;;  %v340_v54 = vmul.f32 %v1236_v48, %v1236_v48 }
  0x53   :  { %v192_v1 = vadd.f32 %v191_v61, %v65_v56  ;;  %v452_v3 = vadd.f32 %v451_v63, %v325_v58  ;;  %v1246_v56 = vld [vmem:[#allocation2 + $0x180] sm:$0xff]  ;;  %v341_v58 = vmul.f32 %v1241_v52, %v1241_v52 }
  0x55   :  { %v193_v5 = vadd.f32 %v192_v1, %v66_v60  ;;  %v453_v7 = vadd.f32 %v452_v3, %v326_v62  ;;  %v1251_v60 = vld [vmem:[#allocation2 + $0x188] sm:$0xff]  ;;  %v342_v62 = vmul.f32 %v1246_v56, %v1246_v56 }
  0x57   :  { %v194_v9 = vadd.f32 %v193_v5, %v67_v0  ;;  %v454_v11 = vadd.f32 %v453_v7, %v327_v2  ;;  %v1256_v0 = vld [vmem:[#allocation2 + $0x190] sm:$0xff]  ;;  %v343_v2 = vmul.f32 %v1251_v60, %v1251_v60  ;;  %v1261_v5 = vld [vmem:[#allocation2 + $0x198] sm:$0xff] }
  0x58   :  { %v344_v7 = vmul.f32 %v1256_v0, %v1256_v0 }
  0x59   :  { %v195_v13 = vadd.f32 %v194_v9, %v1200_v4  ;;  %v455_v15 = vadd.f32 %v454_v11, %v328_v6  ;;  %v1266_v9 = vld [vmem:[#allocation2 + $0x1a0] sm:$0xff]  ;;  %v345_v11 = vmul.f32 %v1261_v5, %v1261_v5 }
  0x5b   :  { %v196_v17 = vadd.f32 %v195_v13, %v69_v8  ;;  %v456_v19 = vadd.f32 %v455_v15, %v329_v10 }
  0x5d   :  { %v197_v21 = vadd.f32 %v196_v17, %v1204_v12  ;;  %v457_v23 = vadd.f32 %v456_v19, %v330_v14  ;;  %v1271_v14 = vld [vmem:[#allocation2 + $0x1a8] sm:$0xff] }
  0x5f   :  { %v198_v25 = vadd.f32 %v197_v21, %v71_v16  ;;  %v458_v27 = vadd.f32 %v457_v23, %v331_v18  ;;  %v346_v16 = vmul.f32 %v1266_v9, %v1266_v9  ;;  %v1276_v18 = vld [vmem:[#allocation2 + $0x1b0] sm:$0xff]  ;;  %v347_v21 = vmul.f32 %v1271_v14, %v1271_v14  ;;  %v1281_v23 = vld [vmem:[#allocation2 + $0x1b8] sm:$0xff] }
  0x61   :  { %v199_v29 = vadd.f32 %v198_v25, %v1209_v20  ;;  %v459_v31 = vadd.f32 %v458_v27, %v332_v22  ;;  %v348_v25 = vmul.f32 %v1276_v18, %v1276_v18  ;;  %v1286_v27 = vld [vmem:[#allocation2 + $0x1c0] sm:$0xff] }
  0x63   :  { %v200_v33 = vadd.f32 %v199_v29, %v73_v24  ;;  %v460_v35 = vadd.f32 %v459_v31, %v333_v26 }
  0x65   :  { %v201_v37 = vadd.f32 %v200_v33, %v1214_v28  ;;  %v461_v39 = vadd.f32 %v460_v35, %v334_v30  ;;  %v349_v30 = vmul.f32 %v1281_v23, %v1281_v23  ;;  %v1291_v33 = vld [vmem:[#allocation2 + $0x1c8] sm:$0xff]  ;;  %v350_v35 = vmul.f32 %v1286_v27, %v1286_v27 }
  0x67   :  { %v202_v41 = vadd.f32 %v201_v37, %v1217_v32  ;;  %v462_v43 = vadd.f32 %v461_v39, %v335_v34 }
  0x69   :  { %v203_v45 = vadd.f32 %v202_v41, %v1221_v36  ;;  %v463_v47 = vadd.f32 %v462_v43, %v336_v38  ;;  %v1296_v38 = vld [vmem:[#allocation2 + $0x1d0] sm:$0xff]  ;;  %v351_v41 = vmul.f32 %v1291_v33, %v1291_v33  ;;  %v1301_v43 = vld [vmem:[#allocation2 + $0x1d8] sm:$0xff] }
  0x6b   :  { %v204_v49 = vadd.f32 %v203_v45, %v1226_v40  ;;  %v464_v51 = vadd.f32 %v463_v47, %v337_v42 }
  0x6d   :  { %v205_v53 = vadd.f32 %v204_v49, %v1231_v44  ;;  %v465_v55 = vadd.f32 %v464_v51, %v338_v46  ;;  %v352_v46 = vmul.f32 %v1296_v38, %v1296_v38  ;;  %v1306_v49 = vld [vmem:[#allocation2 + $0x1e0] sm:$0xff]  ;;  %v353_v51 = vmul.f32 %v1301_v43, %v1301_v43 }
  0x6f   :  { %v206_v57 = vadd.f32 %v205_v53, %v1236_v48  ;;  %v466_v59 = vadd.f32 %v465_v55, %v339_v50 }
  0x71   :  { %v207_v61 = vadd.f32 %v206_v57, %v1241_v52  ;;  %v467_v63 = vadd.f32 %v466_v59, %v340_v54  ;;  %v1311_v54 = vld [vmem:[#allocation2 + $0x1e8] sm:$0xff]  ;;  %v354_v57 = vmul.f32 %v1306_v49, %v1306_v49  ;;  %v1316_v59 = vld [vmem:[#allocation2 + $0x1f0] sm:$0xff] }
  0x73   :  { %v208_v1 = vadd.f32 %v207_v61, %v1246_v56  ;;  %v468_v3 = vadd.f32 %v467_v63, %v341_v58 }
  0x75   :  { %v209_v6 = vadd.f32 %v208_v1, %v1251_v60  ;;  %v469_v8 = vadd.f32 %v468_v3, %v342_v62  ;;  %v355_v62 = vmul.f32 %v1311_v54, %v1311_v54  ;;  %v1321_v1 = vld [vmem:[#allocation2 + $0x1f8] sm:$0xff]  ;;  %v356_v3 = vmul.f32 %v1316_v59, %v1316_v59 }
  0x77   :  { %v210_v10 = vadd.f32 %v209_v6, %v1256_v0  ;;  %v470_v13 = vadd.f32 %v469_v8, %v343_v2 }
  0x79   :  { %v211_v15 = vadd.f32 %v210_v10, %v1261_v5  ;;  %v471_v17 = vadd.f32 %v470_v13, %v344_v7  ;;  %v1326_v7 = vld [vmem:[#allocation2 + $0x200] sm:$0xff]  ;;  %v357_v10 = vmul.f32 %v1321_v1, %v1321_v1  ;;  %v1331_v13 = vld [vmem:[#allocation2 + $0x208] sm:$0xff] }
  0x7b   :  { %v212_v19 = vadd.f32 %v211_v15, %v1266_v9  ;;  %v472_v22 = vadd.f32 %v471_v17, %v345_v11 }
  0x7d   :  { %v213_v24 = vadd.f32 %v212_v19, %v1271_v14  ;;  %v473_v26 = vadd.f32 %v472_v22, %v346_v16  ;;  %v358_v16 = vmul.f32 %v1326_v7, %v1326_v7  ;;  %v1336_v19 = vld [vmem:[#allocation2 + $0x210] sm:$0xff]  ;;  %v359_v22 = vmul.f32 %v1331_v13, %v1331_v13 }
  0x7f   :  { %v214_v29 = vadd.f32 %v213_v24, %v1276_v18  ;;  %v474_v31 = vadd.f32 %v473_v26, %v347_v21 }
  0x81   :  { %v215_v34 = vadd.f32 %v214_v29, %v1281_v23  ;;  %v475_v37 = vadd.f32 %v474_v31, %v348_v25  ;;  %v1341_v25 = vld [vmem:[#allocation2 + $0x218] sm:$0xff]  ;;  %v360_v29 = vmul.f32 %v1336_v19, %v1336_v19  ;;  %v1346_v31 = vld [vmem:[#allocation2 + $0x220] sm:$0xff] }
  0x83   :  { %v216_v39 = vadd.f32 %v215_v34, %v1286_v27  ;;  %v476_v42 = vadd.f32 %v475_v37, %v349_v30 }
  0x85   :  { %v217_v45 = vadd.f32 %v216_v39, %v1291_v33  ;;  %v477_v47 = vadd.f32 %v476_v42, %v350_v35  ;;  %v361_v35 = vmul.f32 %v1341_v25, %v1341_v25  ;;  %v1351_v39 = vld [vmem:[#allocation2 + $0x228] sm:$0xff]  ;;  %v362_v42 = vmul.f32 %v1346_v31, %v1346_v31 }
  0x87   :  { %v218_v50 = vadd.f32 %v217_v45, %v1296_v38  ;;  %v478_v53 = vadd.f32 %v477_v47, %v351_v41 }
  0x89   :  { %v219_v55 = vadd.f32 %v218_v50, %v1301_v43  ;;  %v479_v58 = vadd.f32 %v478_v53, %v352_v46  ;;  %v1356_v46 = vld [vmem:[#allocation2 + $0x230] sm:$0xff]  ;;  %v363_v50 = vmul.f32 %v1351_v39, %v1351_v39  ;;  %v1361_v53 = vld [vmem:[#allocation2 + $0x238] sm:$0xff] }
  0x8b   :  { %v220_v61 = vadd.f32 %v219_v55, %v1306_v49  ;;  %v480_v63 = vadd.f32 %v479_v58, %v353_v51 }
  0x8d   :  { %v221_v2 = vadd.f32 %v220_v61, %v1311_v54  ;;  %v481_v6 = vadd.f32 %v480_v63, %v354_v57  ;;  %v364_v57 = vmul.f32 %v1356_v46, %v1356_v46  ;;  %v1366_v61 = vld [vmem:[#allocation2 + $0x240] sm:$0xff]  ;;  %v365_v63 = vmul.f32 %v1361_v53, %v1361_v53 }
  0x8f   :  { %v222_v8 = vadd.f32 %v221_v2, %v1316_v59  ;;  %v482_v11 = vadd.f32 %v481_v6, %v355_v62 }
  0x91   :  { %v223_v15 = vadd.f32 %v222_v8, %v1321_v1  ;;  %v483_v17 = vadd.f32 %v482_v11, %v356_v3  ;;  %v1371_v3 = vld [vmem:[#allocation2 + $0x248] sm:$0xff]  ;;  %v366_v8 = vmul.f32 %v1366_v61, %v1366_v61  ;;  %v1376_v11 = vld [vmem:[#allocation2 + $0x250] sm:$0xff] }
  0x93   :  { %v224_v21 = vadd.f32 %v223_v15, %v1326_v7  ;;  %v484_v24 = vadd.f32 %v483_v17, %v357_v10 }
  0x95   :  { %v225_v26 = vadd.f32 %v224_v21, %v1331_v13  ;;  %v485_v30 = vadd.f32 %v484_v24, %v358_v16  ;;  %v367_v16 = vmul.f32 %v1371_v3, %v1371_v3  ;;  %v1381_v21 = vld [vmem:[#allocation2 + $0x258] sm:$0xff]  ;;  %v368_v24 = vmul.f32 %v1376_v11, %v1376_v11 }
  0x97   :  { %v226_v34 = vadd.f32 %v225_v26, %v1336_v19  ;;  %v486_v37 = vadd.f32 %v485_v30, %v359_v22 }
  0x99   :  { %v227_v41 = vadd.f32 %v226_v34, %v1341_v25  ;;  %v487_v45 = vadd.f32 %v486_v37, %v360_v29  ;;  %v1386_v29 = vld [vmem:[#allocation2 + $0x260] sm:$0xff]  ;;  %v369_v34 = vmul.f32 %v1381_v21, %v1381_v21  ;;  %v1391_v37 = vld [vmem:[#allocation2 + $0x268] sm:$0xff] }
  0x9a   :  { %2103 = vst [vmem:[#allocation12_spill] sm:$0xff] %v1386_v29  ;;  %2104 = vst [vmem:[#allocation13_spill] sm:$0xff] %v1391_v37 }
  0x9b   :  { %v228_v47 = vadd.f32 %v227_v41, %v1346_v31  ;;  %v488_v51 = vadd.f32 %v487_v45, %v361_v35 }
  0x9d   :  { %v229_v55 = vadd.f32 %v228_v47, %v1351_v39  ;;  %v489_v58 = vadd.f32 %v488_v51, %v362_v42  ;;  %v370_v42 = vmul.f32 %v1386_v29, %v1386_v29  ;;  %v1396_v47 = vld [vmem:[#allocation2 + $0x270] sm:$0xff]  ;;  %v371_v51 = vmul.f32 %v1391_v37, %v1391_v37 }
  0x9e   :  { %2105 = vst [vmem:[#allocation14_spill] sm:$0xff] %v1396_v47 }
  0x9f   :  { %v230_v62 = vadd.f32 %v229_v55, %v1356_v46  ;;  %v490_v2 = vadd.f32 %v489_v58, %v363_v50 }
  0xa1   :  { %v231_v6 = vadd.f32 %v230_v62, %v1361_v53  ;;  %v491_v10 = vadd.f32 %v490_v2, %v364_v57  ;;  %v1401_v57 = vld [vmem:[#allocation2 + $0x278] sm:$0xff]  ;;  %v372_v62 = vmul.f32 %v1396_v47, %v1396_v47  ;;  %v1406_v2 = vld [vmem:[#allocation2 + $0x280] sm:$0xff] }
  0xa2   :  { %2106 = vst [vmem:[#allocation15_spill] sm:$0xff] %v1401_v57  ;;  %2107 = vst [vmem:[#allocation16_spill] sm:$0xff] %v1406_v2 }
  0xa3   :  { %v232_v15 = vadd.f32 %v231_v6, %v1366_v61  ;;  %v492_v17 = vadd.f32 %v491_v10, %v365_v63 }
  0xa5   :  { %v233_v22 = vadd.f32 %v232_v15, %v1371_v3  ;;  %v493_v26 = vadd.f32 %v492_v17, %v366_v8  ;;  %v373_v8 = vmul.f32 %v1401_v57, %v1401_v57  ;;  %v1411_v15 = vld [vmem:[#allocation2 + $0x288] sm:$0xff]  ;;  %v374_v17 = vmul.f32 %v1406_v2, %v1406_v2 }
  0xa6   :  { %2108 = vst [vmem:[#allocation17_spill] sm:$0xff] %v1411_v15 }
  0xa7   :  { %v234_v30 = vadd.f32 %v233_v22, %v1376_v11  ;;  %v494_v35 = vadd.f32 %v493_v26, %v367_v16 }
  0xa9   :  { %v235_v41 = vadd.f32 %v234_v30, %v1381_v21  ;;  %v495_v45 = vadd.f32 %v494_v35, %v368_v24  ;;  %v1416_v24 = vld [vmem:[#allocation2 + $0x290] sm:$0xff]  ;;  %v375_v30 = vmul.f32 %v1411_v15, %v1411_v15  ;;  %v1421_v35 = vld [vmem:[#allocation2 + $0x298] sm:$0xff] }
  0xaa   :  { %2109 = vst [vmem:[#allocation18_spill] sm:$0xff] %v1416_v24  ;;  %2110 = vst [vmem:[#allocation19_spill] sm:$0xff] %v1421_v35 }
  0xab   :  { %v236_v50 = vadd.f32 %v235_v41, %v1386_v29  ;;  %v496_v55 = vadd.f32 %v495_v45, %v369_v34 }
  0xad   :  { %v237_v58 = vadd.f32 %v236_v50, %v1391_v37  ;;  %v497_v63 = vadd.f32 %v496_v55, %v370_v42  ;;  %v376_v42 = vmul.f32 %v1416_v24, %v1416_v24  ;;  %v1426_v50 = vld [vmem:[#allocation2 + $0x2a0] sm:$0xff]  ;;  %v377_v55 = vmul.f32 %v1421_v35, %v1421_v35 }
  0xae   :  { %2111 = vst [vmem:[#allocation20_spill] sm:$0xff] %v1426_v50 }
  0xaf   :  { %v238_v6 = vadd.f32 %v237_v58, %v1396_v47  ;;  %v498_v10 = vadd.f32 %v497_v63, %v371_v51 }
  0xb1   :  { %v239_v16 = vadd.f32 %v238_v6, %v1401_v57  ;;  %v499_v22 = vadd.f32 %v498_v10, %v372_v62  ;;  %v1431_v62 = vld [vmem:[#allocation2 + $0x2a8] sm:$0xff]  ;;  %v378_v6 = vmul.f32 %v1426_v50, %v1426_v50  ;;  %v1436_v10 = vld [vmem:[#allocation2 + $0x2b0] sm:$0xff] }
  0xb2   :  { %2112 = vst [vmem:[#allocation21_spill] sm:$0xff] %v1431_v62  ;;  %2113 = vst [vmem:[#allocation22_spill] sm:$0xff] %v1436_v10 }
  0xb3   :  { %v240_v26 = vadd.f32 %v239_v16, %v1406_v2  ;;  %v500_v34 = vadd.f32 %v499_v22, %v373_v8 }
  0xb5   :  { %v241_v41 = vadd.f32 %v240_v26, %v1411_v15  ;;  %v501_v45 = vadd.f32 %v500_v34, %v374_v17  ;;  %v379_v17 = vmul.f32 %v1431_v62, %v1431_v62  ;;  %v1441_v26 = vld [vmem:[#allocation2 + $0x2b8] sm:$0xff]  ;;  %v380_v34 = vmul.f32 %v1436_v10, %v1436_v10 }
  0xb6   :  { %2114 = vst [vmem:[#allocation23_spill] sm:$0xff] %v1441_v26 }
  0xb7   :  { %v242_v51 = vadd.f32 %v241_v41, %v1416_v24  ;;  %v502_v58 = vadd.f32 %v501_v45, %v375_v30  ;;  %v1446_v45 = vld [vmem:[#allocation2 + $0x2c0] sm:$0xff] }
  0xb8   :  { %2115 = vst [vmem:[#allocation24_spill] sm:$0xff] %v1446_v45 }
  0xb9   :  { %v243_v63 = vadd.f32 %v242_v51, %v1421_v35  ;;  %v503_v8 = vadd.f32 %v502_v58, %v376_v42  ;;  %v381_v51 = vmul.f32 %v1441_v26, %v1441_v26 }
  0xbb   :  { %v244_v16 = vadd.f32 %v243_v63, %v1426_v50  ;;  %v504_v22 = vadd.f32 %v503_v8, %v377_v55  ;;  %v1451_v63 = vld [vmem:[#allocation2 + $0x2c8] sm:$0xff]  ;;  %v382_v8 = vmul.f32 %v1446_v45, %v1446_v45 }
  0xbc   :  { %2116 = vst [vmem:[#allocation25_spill] sm:$0xff] %v1451_v63 }
  0xbd   :  { %v245_v30 = vadd.f32 %v244_v16, %v1431_v62  ;;  %v505_v41 = vadd.f32 %v504_v22, %v378_v6  ;;  %v1456_v62 = vld [vmem:[#allocation2 + $0x2d0] sm:$0xff]  ;;  %v383_v22 = vmul.f32 %v1451_v63, %v1451_v63 }
  0xbe   :  { %2117 = vst [vmem:[#allocation26_spill] sm:$0xff] %v1456_v62 }
  0xbf   :  { %v246_v42 = vadd.f32 %v245_v30, %v1436_v10  ;;  %v506_v58 = vadd.f32 %v505_v41, %v379_v17  ;;  %v1461_v10 = vld [vmem:[#allocation2 + $0x2d8] sm:$0xff]  ;;  %v384_v41 = vmul.f32 %v1456_v62, %v1456_v62 }
  0xc0   :  { %2118 = vst [vmem:[#allocation27_spill] sm:$0xff] %v1461_v10 }
  0xc1   :  { %v247_v55 = vadd.f32 %v246_v42, %v1441_v26  ;;  %v507_v16 = vadd.f32 %v506_v58, %v380_v34  ;;  %v1466_v26 = vld [vmem:[#allocation2 + $0x2e0] sm:$0xff]  ;;  %v385_v58 = vmul.f32 %v1461_v10, %v1461_v10 }
  0xc2   :  { %2119 = vst [vmem:[#allocation28_spill] sm:$0xff] %v1466_v26 }
  0xc3   :  { %v248_v6 = vadd.f32 %v247_v55, %v1446_v45  ;;  %v508_v30 = vadd.f32 %v507_v16, %v381_v51  ;;  %v1471_v45 = vld [vmem:[#allocation2 + $0x2e8] sm:$0xff]  ;;  %v386_v16 = vmul.f32 %v1466_v26, %v1466_v26 }
  0xc4   :  { %2120 = vst [vmem:[#allocation29_spill] sm:$0xff] %v1471_v45 }
  0xc5   :  { %v249_v17 = vadd.f32 %v248_v6, %v1451_v63  ;;  %v509_v42 = vadd.f32 %v508_v30, %v382_v8  ;;  %v1476_v63 = vld [vmem:[#allocation2 + $0x2f0] sm:$0xff]  ;;  %v387_v30 = vmul.f32 %v1471_v45, %v1471_v45 }
  0xc6   :  { %2121 = vst [vmem:[#allocation30_spill] sm:$0xff] %v1476_v63 }
  0xc7   :  { %v250_v34 = vadd.f32 %v249_v17, %v1456_v62  ;;  %v510_v55 = vadd.f32 %v509_v42, %v383_v22  ;;  %v1481_v62 = vld [vmem:[#allocation2 + $0x2f8] sm:$0xff]  ;;  %v388_v42 = vmul.f32 %v1476_v63, %v1476_v63 }
  0xc8   :  { %2122 = vst [vmem:[#allocation31_spill] sm:$0xff] %v1481_v62 }
  0xc9   :  { %v251_v51 = vadd.f32 %v250_v34, %v1461_v10  ;;  %v511_v6 = vadd.f32 %v510_v55, %v384_v41  ;;  %v1486_v10 = vld [vmem:[#allocation2 + $0x300] sm:$0xff]  ;;  %v389_v55 = vmul.f32 %v1481_v62, %v1481_v62 }
  0xca   :  { %2123 = vst [vmem:[#allocation32_spill] sm:$0xff] %v1486_v10 }
  0xcb   :  { %v252_v8 = vadd.f32 %v251_v51, %v1466_v26  ;;  %v512_v17 = vadd.f32 %v511_v6, %v385_v58  ;;  %v1491_v26 = vld [vmem:[#allocation2 + $0x308] sm:$0xff]  ;;  %v390_v6 = vmul.f32 %v1486_v10, %v1486_v10 }
  0xcc   :  { %2124 = vst [vmem:[#allocation33_spill] sm:$0xff] %v1491_v26 }
  0xcd   :  { %v253_v22 = vadd.f32 %v252_v8, %v1471_v45  ;;  %v513_v34 = vadd.f32 %v512_v17, %v386_v16  ;;  %v1496_v45 = vld [vmem:[#allocation2 + $0x310] sm:$0xff]  ;;  %v391_v17 = vmul.f32 %v1491_v26, %v1491_v26 }
  0xce   :  { %2125 = vst [vmem:[#allocation34_spill] sm:$0xff] %v1496_v45 }
  0xcf   :  { %v254_v41 = vadd.f32 %v253_v22, %v1476_v63  ;;  %v514_v51 = vadd.f32 %v513_v34, %v387_v30  ;;  %v1501_v63 = vld [vmem:[#allocation2 + $0x318] sm:$0xff]  ;;  %v392_v34 = vmul.f32 %v1496_v45, %v1496_v45 }
  0xd0   :  { %2126 = vst [vmem:[#allocation35_spill] sm:$0xff] %v1501_v63 }
  0xd1   :  { %v255_v58 = vadd.f32 %v254_v41, %v1481_v62  ;;  %v515_v8 = vadd.f32 %v514_v51, %v388_v42  ;;  %v1506_v62 = vld [vmem:[#allocation2 + $0x320] sm:$0xff]  ;;  %v393_v51 = vmul.f32 %v1501_v63, %v1501_v63 }
  0xd2   :  { %2127 = vst [vmem:[#allocation36_spill] sm:$0xff] %v1506_v62 }
  0xd3   :  { %v256_v16 = vadd.f32 %v255_v58, %v1486_v10  ;;  %v516_v22 = vadd.f32 %v515_v8, %v389_v55  ;;  %v1511_v10 = vld [vmem:[#allocation2 + $0x328] sm:$0xff]  ;;  %v394_v8 = vmul.f32 %v1506_v62, %v1506_v62 }
  0xd4   :  { %2128 = vst [vmem:[#allocation37_spill] sm:$0xff] %v1511_v10 }
  0xd5   :  { %v257_v30 = vadd.f32 %v256_v16, %v1491_v26  ;;  %v517_v41 = vadd.f32 %v516_v22, %v390_v6  ;;  %v1516_v26 = vld [vmem:[#allocation2 + $0x330] sm:$0xff]  ;;  %v395_v22 = vmul.f32 %v1511_v10, %v1511_v10 }
  0xd6   :  { %2129 = vst [vmem:[#allocation38_spill] sm:$0xff] %v1516_v26 }
  0xd7   :  { %v258_v42 = vadd.f32 %v257_v30, %v1496_v45  ;;  %v518_v58 = vadd.f32 %v517_v41, %v391_v17  ;;  %v1521_v45 = vld [vmem:[#allocation2 + $0x338] sm:$0xff]  ;;  %v396_v41 = vmul.f32 %v1516_v26, %v1516_v26 }
  0xd8   :  { %2130 = vst [vmem:[#allocation39_spill] sm:$0xff] %v1521_v45 }
  0xd9   :  { %v259_v55 = vadd.f32 %v258_v42, %v1501_v63  ;;  %v519_v16 = vadd.f32 %v518_v58, %v392_v34  ;;  %v1526_v63 = vld [vmem:[#allocation2 + $0x340] sm:$0xff]  ;;  %v397_v58 = vmul.f32 %v1521_v45, %v1521_v45 }
  0xda   :  { %2131 = vst [vmem:[#allocation40_spill] sm:$0xff] %v1526_v63 }
  0xdb   :  { %v260_v6 = vadd.f32 %v259_v55, %v1506_v62  ;;  %v520_v30 = vadd.f32 %v519_v16, %v393_v51  ;;  %v1531_v62 = vld [vmem:[#allocation2 + $0x348] sm:$0xff]  ;;  %v398_v16 = vmul.f32 %v1526_v63, %v1526_v63 }
  0xdc   :  { %2132 = vst [vmem:[#allocation41_spill] sm:$0xff] %v1531_v62 }
  0xdd   :  { %v261_v17 = vadd.f32 %v260_v6, %v1511_v10  ;;  %v521_v42 = vadd.f32 %v520_v30, %v394_v8  ;;  %v1536_v10 = vld [vmem:[#allocation2 + $0x350] sm:$0xff]  ;;  %v399_v30 = vmul.f32 %v1531_v62, %v1531_v62 }
  0xde   :  { %2133 = vst [vmem:[#allocation42_spill] sm:$0xff] %v1536_v10 }
  0xdf   :  { %v262_v34 = vadd.f32 %v261_v17, %v1516_v26  ;;  %v522_v55 = vadd.f32 %v521_v42, %v395_v22  ;;  %v1541_v26 = vld [vmem:[#allocation2 + $0x358] sm:$0xff]  ;;  %v400_v42 = vmul.f32 %v1536_v10, %v1536_v10 }
  0xe0   :  { %2134 = vst [vmem:[#allocation43_spill] sm:$0xff] %v1541_v26 }
  0xe1   :  { %v263_v51 = vadd.f32 %v262_v34, %v1521_v45  ;;  %v523_v6 = vadd.f32 %v522_v55, %v396_v41  ;;  %v1546_v45 = vld [vmem:[#allocation2 + $0x360] sm:$0xff]  ;;  %v401_v55 = vmul.f32 %v1541_v26, %v1541_v26 }
  0xe2   :  { %2135 = vst [vmem:[#allocation44_spill] sm:$0xff] %v1546_v45 }
  0xe3   :  { %v264_v8 = vadd.f32 %v263_v51, %v1526_v63  ;;  %v524_v17 = vadd.f32 %v523_v6, %v397_v58  ;;  %v1551_v63 = vld [vmem:[#allocation2 + $0x368] sm:$0xff]  ;;  %v402_v6 = vmul.f32 %v1546_v45, %v1546_v45 }
  0xe4   :  { %2136 = vst [vmem:[#allocation45_spill] sm:$0xff] %v1551_v63 }
  0xe5   :  { %v265_v22 = vadd.f32 %v264_v8, %v1531_v62  ;;  %v525_v34 = vadd.f32 %v524_v17, %v398_v16  ;;  %v1556_v62 = vld [vmem:[#allocation2 + $0x370] sm:$0xff]  ;;  %v403_v17 = vmul.f32 %v1551_v63, %v1551_v63 }
  0xe6   :  { %2137 = vst [vmem:[#allocation46_spill] sm:$0xff] %v1556_v62 }
  0xe7   :  { %v266_v41 = vadd.f32 %v265_v22, %v1536_v10  ;;  %v526_v51 = vadd.f32 %v525_v34, %v399_v30  ;;  %v1561_v10 = vld [vmem:[#allocation2 + $0x378] sm:$0xff]  ;;  %v404_v34 = vmul.f32 %v1556_v62, %v1556_v62 }
  0xe8   :  { %2138 = vst [vmem:[#allocation47_spill] sm:$0xff] %v1561_v10 }
  0xe9   :  { %v267_v58 = vadd.f32 %v266_v41, %v1541_v26  ;;  %v527_v8 = vadd.f32 %v526_v51, %v400_v42  ;;  %v1566_v26 = vld [vmem:[#allocation2 + $0x380] sm:$0xff]  ;;  %v405_v51 = vmul.f32 %v1561_v10, %v1561_v10 }
  0xea   :  { %2139 = vst [vmem:[#allocation48_spill] sm:$0xff] %v1566_v26 }
  0xeb   :  { %v268_v16 = vadd.f32 %v267_v58, %v1546_v45  ;;  %v528_v22 = vadd.f32 %v527_v8, %v401_v55  ;;  %v1571_v45 = vld [vmem:[#allocation2 + $0x388] sm:$0xff]  ;;  %v406_v8 = vmul.f32 %v1566_v26, %v1566_v26 }
  0xec   :  { %2140 = vst [vmem:[#allocation49_spill] sm:$0xff] %v1571_v45 }
  0xed   :  { %v269_v30 = vadd.f32 %v268_v16, %v1551_v63  ;;  %v529_v41 = vadd.f32 %v528_v22, %v402_v6  ;;  %v1576_v63 = vld [vmem:[#allocation2 + $0x390] sm:$0xff]  ;;  %v407_v22 = vmul.f32 %v1571_v45, %v1571_v45 }
  0xee   :  { %2141 = vst [vmem:[#allocation50_spill] sm:$0xff] %v1576_v63 }
  0xef   :  { %v270_v42 = vadd.f32 %v269_v30, %v1556_v62  ;;  %v530_v58 = vadd.f32 %v529_v41, %v403_v17  ;;  %v1581_v62 = vld [vmem:[#allocation2 + $0x398] sm:$0xff]  ;;  %v408_v41 = vmul.f32 %v1576_v63, %v1576_v63 }
  0xf0   :  { %2142 = vst [vmem:[#allocation51_spill] sm:$0xff] %v1581_v62 }
  0xf1   :  { %v271_v55 = vadd.f32 %v270_v42, %v1561_v10  ;;  %v531_v16 = vadd.f32 %v530_v58, %v404_v34  ;;  %v1586_v10 = vld [vmem:[#allocation2 + $0x3a0] sm:$0xff]  ;;  %v409_v58 = vmul.f32 %v1581_v62, %v1581_v62 }
  0xf2   :  { %2143 = vst [vmem:[#allocation52_spill] sm:$0xff] %v1586_v10 }
  0xf3   :  { %v272_v6 = vadd.f32 %v271_v55, %v1566_v26  ;;  %v532_v30 = vadd.f32 %v531_v16, %v405_v51  ;;  %v1591_v26 = vld [vmem:[#allocation2 + $0x3a8] sm:$0xff]  ;;  %v410_v16 = vmul.f32 %v1586_v10, %v1586_v10 }
  0xf4   :  { %2144 = vst [vmem:[#allocation53_spill] sm:$0xff] %v1591_v26 }
  0xf5   :  { %v273_v17 = vadd.f32 %v272_v6, %v1571_v45  ;;  %v533_v42 = vadd.f32 %v532_v30, %v406_v8  ;;  %v1596_v45 = vld [vmem:[#allocation2 + $0x3b0] sm:$0xff]  ;;  %v411_v30 = vmul.f32 %v1591_v26, %v1591_v26 }
  0xf6   :  { %2145 = vst [vmem:[#allocation54_spill] sm:$0xff] %v1596_v45 }
  0xf7   :  { %v274_v34 = vadd.f32 %v273_v17, %v1576_v63  ;;  %v534_v55 = vadd.f32 %v533_v42, %v407_v22  ;;  %v1601_v63 = vld [vmem:[#allocation2 + $0x3b8] sm:$0xff]  ;;  %v412_v42 = vmul.f32 %v1596_v45, %v1596_v45 }
  0xf8   :  { %2146 = vst [vmem:[#allocation55_spill] sm:$0xff] %v1601_v63 }
  0xf9   :  { %v275_v51 = vadd.f32 %v274_v34, %v1581_v62  ;;  %v535_v6 = vadd.f32 %v534_v55, %v408_v41  ;;  %v1606_v62 = vld [vmem:[#allocation2 + $0x3c0] sm:$0xff]  ;;  %v413_v55 = vmul.f32 %v1601_v63, %v1601_v63 }
  0xfa   :  { %2147 = vst [vmem:[#allocation56_spill] sm:$0xff] %v1606_v62 }
  0xfb   :  { %v276_v8 = vadd.f32 %v275_v51, %v1586_v10  ;;  %v536_v17 = vadd.f32 %v535_v6, %v409_v58  ;;  %v1611_v10 = vld [vmem:[#allocation2 + $0x3c8] sm:$0xff]  ;;  %v414_v6 = vmul.f32 %v1606_v62, %v1606_v62 }
  0xfc   :  { %2148 = vst [vmem:[#allocation57_spill] sm:$0xff] %v1611_v10 }
  0xfd   :  { %v277_v22 = vadd.f32 %v276_v8, %v1591_v26  ;;  %v537_v34 = vadd.f32 %v536_v17, %v410_v16  ;;  %v1616_v26 = vld [vmem:[#allocation2 + $0x3d0] sm:$0xff]  ;;  %v415_v17 = vmul.f32 %v1611_v10, %v1611_v10 }
  0xfe   :  { %2149 = vst [vmem:[#allocation58_spill] sm:$0xff] %v1616_v26 }
  0xff   :  { %v278_v41 = vadd.f32 %v277_v22, %v1596_v45  ;;  %v538_v51 = vadd.f32 %v537_v34, %v411_v30  ;;  %v1621_v45 = vld [vmem:[#allocation2 + $0x3d8] sm:$0xff]  ;;  %v416_v34 = vmul.f32 %v1616_v26, %v1616_v26 }
 0x100   :  { %2150 = vst [vmem:[#allocation59_spill] sm:$0xff] %v1621_v45 }
 0x101   :  { %v279_v58 = vadd.f32 %v278_v41, %v1601_v63  ;;  %v539_v8 = vadd.f32 %v538_v51, %v412_v42  ;;  %v1626_v63 = vld [vmem:[#allocation2 + $0x3e0] sm:$0xff]  ;;  %v417_v51 = vmul.f32 %v1621_v45, %v1621_v45 }
 0x102   :  { %2151 = vst [vmem:[#allocation60_spill] sm:$0xff] %v1626_v63 }
 0x103   :  { %v280_v16 = vadd.f32 %v279_v58, %v1606_v62  ;;  %v540_v22 = vadd.f32 %v539_v8, %v413_v55  ;;  %v1631_v62 = vld [vmem:[#allocation2 + $0x3e8] sm:$0xff]  ;;  %v418_v8 = vmul.f32 %v1626_v63, %v1626_v63 }
 0x104   :  { %2152 = vst [vmem:[#allocation61_spill] sm:$0xff] %v1631_v62 }
 0x105   :  { %v281_v30 = vadd.f32 %v280_v16, %v1611_v10  ;;  %v541_v41 = vadd.f32 %v540_v22, %v414_v6  ;;  %v1636_v10 = vld [vmem:[#allocation2 + $0x3f0] sm:$0xff]  ;;  %v419_v22 = vmul.f32 %v1631_v62, %v1631_v62 }
 0x106   :  { %2153 = vst [vmem:[#allocation62_spill] sm:$0xff] %v1636_v10 }
 0x107   :  { %v282_v42 = vadd.f32 %v281_v30, %v1616_v26  ;;  %v542_v58 = vadd.f32 %v541_v41, %v415_v17  ;;  %v1641_v26 = vld [vmem:[#allocation2 + $0x3f8] sm:$0xff]  ;;  %v420_v41 = vmul.f32 %v1636_v10, %v1636_v10 }
 0x108   :  { %2154 = vst [vmem:[#allocation63_spill] sm:$0xff] %v1641_v26 }
 0x109   :  { %v283_v55 = vadd.f32 %v282_v42, %v1621_v45  ;;  %v543_v16 = vadd.f32 %v542_v58, %v416_v34  ;;  %v421_v34 = vmul.f32 %v1641_v26, %v1641_v26 }
 0x10b   :  { %v284_v6 = vadd.f32 %v283_v55, %v1626_v63  ;;  %v544_v30 = vadd.f32 %v543_v16, %v417_v51 }
 0x10d   :  { %v285_v17 = vadd.f32 %v284_v6, %v1631_v62  ;;  %v545_v42 = vadd.f32 %v544_v30, %v418_v8 }
 0x10f   :  { %v286_v45 = vadd.f32 %v285_v17, %v1636_v10  ;;  %v546_v58 = vadd.f32 %v545_v42, %v419_v22 }
 0x111   :  { %v287_v55 = vadd.f32 %v286_v45, %v1641_v26  ;;  %v547_v63 = vadd.f32 %v546_v58, %v420_v41 }
 0x113   :  { %v288_v50 = vrot.slane %v287_v55, 4  ;;  %v548_v35 = vadd.f32 %v547_v63, %v421_v34 }
 0x115   :  { %v289_v51 = vadd.f32 %v288_v50, %v287_v55  ;;  %v549_v16 = vrot.slane %v548_v35, 4 }
 0x117   :  { %v290_v24 = vrot.slane %v289_v51, 2  ;;  %v550_v15 = vadd.f32 %v549_v16, %v548_v35 }
 0x119   :  { %v291_v6 = vadd.f32 %v290_v24, %v289_v51  ;;  %v551_v62 = vrot.slane %v550_v15, 2 }
 0x11b   :  { %v292_v2 = vrot.slane %v291_v6, 1  ;;  %v552_v57 = vadd.f32 %v551_v62, %v550_v15 }
 0x11d   :  { %v293_v8 = vadd.f32 %v292_v2, %v291_v6  ;;  %v553_v30 = vrot.slane %v552_v57, 1 }
 0x11f   :  { %v555_v17 = vmul.f32 0.0009765625, %v293_v8  ;;  %v554_v22 = vadd.f32 %v553_v30, %v552_v57 }
 0x121   :  { %v557_v42 = vmul.f32 %v555_v17, %v555_v17  ;;  %963 = vst [vmem:[#allocation6] sm:$0x1] %v555_v17  ;;  %v556_v45 = vmul.f32 0.0009765625, %v554_v22 }
 0x122   :  { %1088 = shalt.err (!%p1085_p12)
}
 0x123   :  { %s1089_s12 = scalar_lea.hbm %s2049_s4, 16 }
 0x124   :  { %p1090_p13 = scmp.ne.s32.totalorder %s2049_s4, %s1089_s12  ;;  %p1093_p0 = scmp.lt.u32.totalorder %s1089_s12, %s2049_s4 }
 0x126   :  { %p1095_p1 = pnand %p1093_p0, %p1090_p13 }
 0x128   :  { %1098 = shalt.err (!%p1095_p1)
}
 0x129   :  { %986 = dma.vmem_to_hbm [thread:$0]  %s984_s7, 16, %s2049_s4, [#allocation7]   ;;  %v558_v57 = vsub.f32 %v556_v45, %v557_v42 }
 0x12a   :  { %s1153_s19 = smov [#allocation8]  }
 0x12b   :  { %s993_s20 = sshll.u32 %s1153_s19, 4  ;;  %v559_v2 = vmax.f32 %v558_v57, 0.0  ;;  %s994_s20 = int_to_ptr.vmem [resolvable:$true] %s993_s20 }
 0x12c   :  { %s1099_s21 = scalar_lea.vmem %s994_s20, 16  ;;  %s1103_s22 = scalar_lea.vmem %s994_s20, 32 }
 0x12d   :  { %v560_v15 = vadd.f32 1e-05, %v559_v2  ;;  %964 = vst [vmem:[#allocation8] sm:$0x1] %v559_v2  ;;  %p1100_p2 = scmp.ne.s32.totalorder %s994_s20, %s1099_s21  ;;  %p1104_p3 = scmp.lt.s32.totalorder %s994_s20, %s994_s20 }
 0x12e   :  { %p1105_p4 = scmp.lt.s32.totalorder %s1103_s22, %s1099_s21 }
 0x130   :  { %p1106_p5 = por %p1105_p4, %p1104_p3 }
 0x132   :  { %p1107_p6 = pnand %p1106_p5, %p1100_p2 }
 0x134   :  { %1110 = shalt.err (!%p1107_p6)
}
 0x135   :  { %s1111_s25 = scalar_lea.hbm %s2050_s5, 16 }
 0x136   :  { %p1112_p7 = scmp.ne.s32.totalorder %s2050_s5, %s1111_s25  ;;  %p1115_p8 = scmp.lt.u32.totalorder %s1111_s25, %s2050_s5 }
 0x138   :  { %p1117_p9 = pnand %p1115_p8, %p1112_p7 }
 0x13a   :  { %1120 = shalt.err (!%p1117_p9)
}
 0x13b   :  { %996 = dma.vmem_to_hbm [thread:$0]  %s994_s20, 16, %s2050_s5, [#allocation7]   ;;  %1015 = vrsqrt.f32 %v560_v15  ;;  %v568_v24 = vlaneseq  ;;  %v562_v50 = vld [vmem:[%s2046_s1] sm:$0x1]  ;;  %v1018_v8 = vld [vmem:[#allocation2 + $0x8] sm:$0xff]  ;;  %v1019_v22 = vld [vmem:[#allocation2 + $0x10] sm:$0xff] }
 0x13c   :  { %v564_v34 = vld [vmem:[%s2047_s2] sm:$0x1]  ;;  %v1020_v45 = vld [vmem:[#allocation2 + $0x18] sm:$0xff]  ;;  %s1154_s1 = smov [#allocation5]  }
 0x13d   :  { %v569_v35 = vshrl.u32 %v568_v24, 7  ;;  %v1017_v16 = vld [vmem:[#allocation2] sm:$0xff]  ;;  %v1022_v24 = vld [vmem:[#allocation2 + $0x28] sm:$0xff]  ;;  %v1028_v26 = vld [vmem:[#allocation2 + $0x58] sm:$0xff]  ;;  %s970_s2 = sshll.u32 %s1154_s1, 4  ;;  %s971_s2 = int_to_ptr.vmem [resolvable:$true] %s970_s2 }
 0x13e   :  { %v1021_v2 = vld [vmem:[#allocation2 + $0x20] sm:$0xff]  ;;  %s1121_s5 = scalar_lea.vmem %s971_s2, 16384  ;;  %p1126_p11 = scmp.lt.s32.totalorder %s971_s2, %s971_s2 }
 0x13f   :  { %v570_v62 = vsub.s32 0, %v569_v35  ;;  %v1023_v35 = vld [vmem:[#allocation2 + $0x30] sm:$0xff]  ;;  %v1029_v10 = vld [vmem:[#allocation2 + $0x60] sm:$0xff]  ;;  %p1122_p10 = scmp.ne.s32.totalorder %s971_s2, %s1121_s5  ;;  %p1127_p12 = scmp.lt.s32.totalorder %s1121_s5, %s1121_s5 }
 0x141   :  { %p1128_p13 = por %p1127_p12, %p1126_p11 }
 0x143   :  { %p1129_p0 = pnand %p1128_p13, %p1122_p10 }
 0x145   :  { %v1016_v63 = vpop.eup %1015 }
 0x146   :  { %v563_v41 = vmul.f32 %v1016_v63, %v562_v50 }
 0x148   :  { %v565_v58 = vmul.f32 %v563_v41, %v555_v17  ;;  %v1680_v55 = vrot.slane %v563_v41, %v570_v62  ;;  %v1024_v41 = vld [vmem:[#allocation2 + $0x38] sm:$0xff] }
 0x14a   :  { %v566_v51 = vsub.f32 %v564_v34, %v565_v58  ;;  %v573_v6 = vmul.f32 %v1017_v16, %v1680_v55  ;;  %v574_v30 = vmul.f32 %v1018_v8, %v1680_v55  ;;  %v575_v42 = vmul.f32 %v1019_v22, %v1680_v55  ;;  %v1025_v58 = vld [vmem:[#allocation2 + $0x40] sm:$0xff]  ;;  %v1026_v8 = vld [vmem:[#allocation2 + $0x48] sm:$0xff] }
 0x14b   :  { %v576_v57 = vmul.f32 %v1020_v45, %v1680_v55  ;;  %v577_v15 = vmul.f32 %v1021_v2, %v1680_v55  ;;  %v578_v17 = vmul.f32 %v1022_v24, %v1680_v55  ;;  %v579_v50 = vmul.f32 %v1023_v35, %v1680_v55  ;;  %v1027_v45 = vld [vmem:[#allocation2 + $0x50] sm:$0xff] }
 0x14c   :  { %v1689_v63 = vrot.slane %v566_v51, %v570_v62  ;;  %v580_v34 = vmul.f32 %v1024_v41, %v1680_v55  ;;  %v581_v16 = vmul.f32 %v1025_v58, %v1680_v55  ;;  %v582_v22 = vmul.f32 %v1026_v8, %v1680_v55  ;;  %v1030_v62 = vld [vmem:[#allocation2 + $0x68] sm:$0xff] }
 0x14d   :  { %v583_v2 = vmul.f32 %v1027_v45, %v1680_v55  ;;  %v584_v24 = vmul.f32 %v1028_v26, %v1680_v55  ;;  %v585_v35 = vmul.f32 %v1029_v10, %v1680_v55  ;;  %v586_v51 = vmul.f32 %v1030_v62, %v1680_v55 }
 0x14e   :  { %v707_v41 = vadd.f32 %v1689_v63, %v573_v6  ;;  %v708_v47 = vadd.f32 %v1689_v63, %v574_v30  ;;  %v709_v58 = vadd.f32 %v1689_v63, %v575_v42  ;;  %v710_v8 = vadd.f32 %v1689_v63, %v576_v57 }
 0x14f   :  { %v711_v37 = vadd.f32 %v1689_v63, %v577_v15  ;;  %v712_v45 = vadd.f32 %v1689_v63, %v578_v17  ;;  %v713_v26 = vadd.f32 %v1689_v63, %v579_v50  ;;  %v714_v29 = vadd.f32 %v1689_v63, %v580_v34  ;;  %v1031_v17 = vld [vmem:[#allocation2 + $0x70] sm:$0xff]  ;;  %v1032_v50 = vld [vmem:[#allocation2 + $0x78] sm:$0xff] }
 0x150   :  { %835 = vst [vmem:[#allocation5] sm:$0xff] %v707_v41  ;;  %836 = vst [vmem:[#allocation5 + $0x8] sm:$0xff] %v708_v47  ;;  %v715_v10 = vadd.f32 %v1689_v63, %v581_v16  ;;  %v716_v6 = vadd.f32 %v1689_v63, %v582_v22  ;;  %v717_v30 = vadd.f32 %v1689_v63, %v583_v2  ;;  %v1033_v16 = vld [vmem:[#allocation2 + $0x80] sm:$0xff]  ;;  %v1034_v22 = vld [vmem:[#allocation2 + $0x88] sm:$0xff] }
 0x151   :  { %837 = vst [vmem:[#allocation5 + $0x10] sm:$0xff] %v709_v58  ;;  %838 = vst [vmem:[#allocation5 + $0x18] sm:$0xff] %v710_v8  ;;  %v718_v42 = vadd.f32 %v1689_v63, %v584_v24  ;;  %v719_v57 = vadd.f32 %v1689_v63, %v585_v35  ;;  %v720_v15 = vadd.f32 %v1689_v63, %v586_v51  ;;  %v1035_v2 = vld [vmem:[#allocation2 + $0x90] sm:$0xff]  ;;  %v1036_v35 = vld [vmem:[#allocation2 + $0x98] sm:$0xff] }
 0x152   :  { %839 = vst [vmem:[#allocation5 + $0x20] sm:$0xff] %v711_v37  ;;  %840 = vst [vmem:[#allocation5 + $0x28] sm:$0xff] %v712_v45  ;;  %v587_v47 = vmul.f32 %v1031_v17, %v1680_v55  ;;  %v588_v34 = vmul.f32 %v1032_v50, %v1680_v55  ;;  %v589_v37 = vmul.f32 %v1033_v16, %v1680_v55  ;;  %v1037_v58 = vld [vmem:[#allocation2 + $0xa0] sm:$0xff]  ;;  %v1038_v45 = vld [vmem:[#allocation2 + $0xa8] sm:$0xff] }
 0x153   :  { %841 = vst [vmem:[#allocation5 + $0x30] sm:$0xff] %v713_v26  ;;  %842 = vst [vmem:[#allocation5 + $0x38] sm:$0xff] %v714_v29  ;;  %v590_v29 = vmul.f32 %v1034_v22, %v1680_v55  ;;  %v591_v24 = vmul.f32 %v1035_v2, %v1680_v55  ;;  %v592_v62 = vmul.f32 %v1036_v35, %v1680_v55  ;;  %v1039_v17 = vld [vmem:[#allocation2 + $0xb0] sm:$0xff]  ;;  %v1040_v50 = vld [vmem:[#allocation2 + $0xb8] sm:$0xff] }
 0x154   :  { %843 = vst [vmem:[#allocation5 + $0x40] sm:$0xff] %v715_v10  ;;  %844 = vst [vmem:[#allocation5 + $0x48] sm:$0xff] %v716_v6  ;;  %v721_v51 = vadd.f32 %v1689_v63, %v587_v47  ;;  %v722_v41 = vadd.f32 %v1689_v63, %v588_v34  ;;  %v593_v8 = vmul.f32 %v1037_v58, %v1680_v55  ;;  %v1041_v16 = vld [vmem:[#allocation2 + $0xc0] sm:$0xff]  ;;  %v1042_v22 = vld [vmem:[#allocation2 + $0xc8] sm:$0xff] }
 0x155   :  { %845 = vst [vmem:[#allocation5 + $0x50] sm:$0xff] %v717_v30  ;;  %846 = vst [vmem:[#allocation5 + $0x58] sm:$0xff] %v718_v42  ;;  %v594_v26 = vmul.f32 %v1038_v45, %v1680_v55  ;;  %v723_v10 = vadd.f32 %v1689_v63, %v589_v37  ;;  %v724_v6 = vadd.f32 %v1689_v63, %v590_v29  ;;  %v1043_v2 = vld [vmem:[#allocation2 + $0xd0] sm:$0xff]  ;;  %v1044_v35 = vld [vmem:[#allocation2 + $0xd8] sm:$0xff] }
 0x156   :  { %847 = vst [vmem:[#allocation5 + $0x60] sm:$0xff] %v719_v57  ;;  %848 = vst [vmem:[#allocation5 + $0x68] sm:$0xff] %v720_v15  ;;  %v725_v30 = vadd.f32 %v1689_v63, %v591_v24  ;;  %v726_v42 = vadd.f32 %v1689_v63, %v592_v62  ;;  %v727_v57 = vadd.f32 %v1689_v63, %v593_v8  ;;  %v1045_v58 = vld [vmem:[#allocation2 + $0xe0] sm:$0xff]  ;;  %v1046_v45 = vld [vmem:[#allocation2 + $0xe8] sm:$0xff] }
 0x157   :  { %849 = vst [vmem:[#allocation5 + $0x70] sm:$0xff] %v721_v51  ;;  %850 = vst [vmem:[#allocation5 + $0x78] sm:$0xff] %v722_v41  ;;  %v728_v15 = vadd.f32 %v1689_v63, %v594_v26  ;;  %v595_v47 = vmul.f32 %v1039_v17, %v1680_v55  ;;  %v596_v34 = vmul.f32 %v1040_v50, %v1680_v55  ;;  %v1047_v17 = vld [vmem:[#allocation2 + $0xf0] sm:$0xff]  ;;  %v1048_v50 = vld [vmem:[#allocation2 + $0xf8] sm:$0xff] }
 0x158   :  { %851 = vst [vmem:[#allocation5 + $0x80] sm:$0xff] %v723_v10  ;;  %852 = vst [vmem:[#allocation5 + $0x88] sm:$0xff] %v724_v6  ;;  %v597_v37 = vmul.f32 %v1041_v16, %v1680_v55  ;;  %v598_v29 = vmul.f32 %v1042_v22, %v1680_v55  ;;  %v599_v24 = vmul.f32 %v1043_v2, %v1680_v55  ;;  %v1049_v16 = vld [vmem:[#allocation2 + $0x100] sm:$0xff]  ;;  %v1050_v22 = vld [vmem:[#allocation2 + $0x108] sm:$0xff] }
 0x159   :  { %853 = vst [vmem:[#allocation5 + $0x90] sm:$0xff] %v725_v30  ;;  %854 = vst [vmem:[#allocation5 + $0x98] sm:$0xff] %v726_v42  ;;  %v600_v62 = vmul.f32 %v1044_v35, %v1680_v55  ;;  %v729_v51 = vadd.f32 %v1689_v63, %v595_v47  ;;  %v730_v41 = vadd.f32 %v1689_v63, %v596_v34  ;;  %v1051_v2 = vld [vmem:[#allocation2 + $0x110] sm:$0xff] }
 0x15a   :  { %855 = vst [vmem:[#allocation5 + $0xa0] sm:$0xff] %v727_v57  ;;  %856 = vst [vmem:[#allocation5 + $0xa8] sm:$0xff] %v728_v15  ;;  %v601_v8 = vmul.f32 %v1045_v58, %v1680_v55  ;;  %v602_v26 = vmul.f32 %v1046_v45, %v1680_v55  ;;  %v731_v10 = vadd.f32 %v1689_v63, %v597_v37 }
 0x15b   :  { %v732_v6 = vadd.f32 %v1689_v63, %v598_v29  ;;  %v733_v30 = vadd.f32 %v1689_v63, %v599_v24  ;;  %v734_v42 = vadd.f32 %v1689_v63, %v600_v62  ;;  %857 = vst [vmem:[#allocation5 + $0xb0] sm:$0xff] %v729_v51  ;;  %858 = vst [vmem:[#allocation5 + $0xb8] sm:$0xff] %v730_v41  ;;  %v1052_v41 = vld [vmem:[#allocation2 + $0x120] sm:$0xff] }
 0x15c   :  { %v735_v57 = vadd.f32 %v1689_v63, %v601_v8  ;;  %v736_v15 = vadd.f32 %v1689_v63, %v602_v26  ;;  %v603_v47 = vmul.f32 %v1047_v17, %v1680_v55  ;;  %v604_v34 = vmul.f32 %v1048_v50, %v1680_v55  ;;  %859 = vst [vmem:[#allocation5 + $0xc0] sm:$0xff] %v731_v10 }
 0x15d   :  { %860 = vst [vmem:[#allocation5 + $0xc8] sm:$0xff] %v732_v6  ;;  %861 = vst [vmem:[#allocation5 + $0xd0] sm:$0xff] %v733_v30  ;;  %v605_v37 = vmul.f32 %v1049_v16, %v1680_v55  ;;  %v606_v29 = vmul.f32 %v1050_v22, %v1680_v55  ;;  %v607_v24 = vmul.f32 %v1051_v2, %v1680_v55 }
 0x15e   :  { %862 = vst [vmem:[#allocation5 + $0xd8] sm:$0xff] %v734_v42  ;;  %v608_v35 = vmul.f32 %v1680_v55, %v1200_v4  ;;  %863 = vst [vmem:[#allocation5 + $0xe0] sm:$0xff] %v735_v57  ;;  %v737_v62 = vadd.f32 %v1689_v63, %v603_v47  ;;  %v738_v51 = vadd.f32 %v1689_v63, %v604_v34  ;;  %v1053_v42 = vld [vmem:[#allocation2 + $0x130] sm:$0xff] }
 0x15f   :  { %864 = vst [vmem:[#allocation5 + $0xe8] sm:$0xff] %v736_v15  ;;  %v609_v58 = vmul.f32 %v1052_v41, %v1680_v55  ;;  %v610_v8 = vmul.f32 %v1680_v55, %v1204_v12  ;;  %v739_v45 = vadd.f32 %v1689_v63, %v605_v37  ;;  %v740_v26 = vadd.f32 %v1689_v63, %v606_v29  ;;  %v1054_v15 = vld [vmem:[#allocation2 + $0x140] sm:$0xff] }
 0x160   :  { %v741_v10 = vadd.f32 %v1689_v63, %v607_v24  ;;  %v742_v4 = vadd.f32 %v1689_v63, %v608_v35  ;;  %865 = vst [vmem:[#allocation5 + $0xf0] sm:$0xff] %v737_v62  ;;  %866 = vst [vmem:[#allocation5 + $0xf8] sm:$0xff] %v738_v51  ;;  %v611_v57 = vmul.f32 %v1053_v42, %v1680_v55 }
 0x161   :  { %v743_v6 = vadd.f32 %v1689_v63, %v609_v58  ;;  %v744_v30 = vadd.f32 %v1689_v63, %v610_v8  ;;  %v612_v12 = vmul.f32 %v1680_v55, %v1209_v20  ;;  %867 = vst [vmem:[#allocation5 + $0x100] sm:$0xff] %v739_v45  ;;  %868 = vst [vmem:[#allocation5 + $0x108] sm:$0xff] %v740_v26 }
 0x162   :  { %869 = vst [vmem:[#allocation5 + $0x110] sm:$0xff] %v741_v10  ;;  %870 = vst [vmem:[#allocation5 + $0x118] sm:$0xff] %v742_v4  ;;  %v613_v17 = vmul.f32 %v1054_v15, %v1680_v55  ;;  %v614_v47 = vmul.f32 %v1680_v55, %v1214_v28  ;;  %v615_v50 = vmul.f32 %v1680_v55, %v1217_v32 }
 0x163   :  { %v616_v34 = vmul.f32 %v1680_v55, %v1221_v36  ;;  %871 = vst [vmem:[#allocation5 + $0x120] sm:$0xff] %v743_v6  ;;  %872 = vst [vmem:[#allocation5 + $0x128] sm:$0xff] %v744_v30  ;;  %v745_v20 = vadd.f32 %v1689_v63, %v611_v57  ;;  %v746_v16 = vadd.f32 %v1689_v63, %v612_v12 }
 0x164   :  { %v617_v37 = vmul.f32 %v1680_v55, %v1226_v40  ;;  %v618_v22 = vmul.f32 %v1680_v55, %v1231_v44  ;;  %v747_v28 = vadd.f32 %v1689_v63, %v613_v17  ;;  %v748_v29 = vadd.f32 %v1689_v63, %v614_v47 }
 0x165   :  { %v749_v32 = vadd.f32 %v1689_v63, %v615_v50  ;;  %v750_v36 = vadd.f32 %v1689_v63, %v616_v34  ;;  %873 = vst [vmem:[#allocation5 + $0x130] sm:$0xff] %v745_v20  ;;  %874 = vst [vmem:[#allocation5 + $0x138] sm:$0xff] %v746_v16  ;;  %v619_v40 = vmul.f32 %v1680_v55, %v1236_v48 }
 0x166   :  { %v751_v2 = vadd.f32 %v1689_v63, %v617_v37  ;;  %v752_v24 = vadd.f32 %v1689_v63, %v618_v22  ;;  %v620_v44 = vmul.f32 %v1680_v55, %v1241_v52  ;;  %875 = vst [vmem:[#allocation5 + $0x140] sm:$0xff] %v747_v28  ;;  %876 = vst [vmem:[#allocation5 + $0x148] sm:$0xff] %v748_v29 }
 0x167   :  { %877 = vst [vmem:[#allocation5 + $0x150] sm:$0xff] %v749_v32  ;;  %878 = vst [vmem:[#allocation5 + $0x158] sm:$0xff] %v750_v36  ;;  %v621_v35 = vmul.f32 %v1680_v55, %v1246_v56  ;;  %v622_v62 = vmul.f32 %v1680_v55, %v1251_v60  ;;  %v623_v51 = vmul.f32 %v1680_v55, %v1256_v0 }
 0x168   :  { %v624_v41 = vmul.f32 %v1680_v55, %v1261_v5  ;;  %879 = vst [vmem:[#allocation5 + $0x160] sm:$0xff] %v751_v2  ;;  %880 = vst [vmem:[#allocation5 + $0x168] sm:$0xff] %v752_v24  ;;  %v753_v48 = vadd.f32 %v1689_v63, %v619_v40  ;;  %v754_v52 = vadd.f32 %v1689_v63, %v620_v44  ;;  %v2155_v2 = vld [vmem:[#allocation12_spill] sm:$0xff]  ;;  %v2156_v40 = vld [vmem:[#allocation13_spill] sm:$0xff] }
 0x169   :  { %v625_v58 = vmul.f32 %v1680_v55, %v1266_v9  ;;  %v626_v56 = vmul.f32 %v1680_v55, %v1271_v14  ;;  %v755_v60 = vadd.f32 %v1689_v63, %v621_v35  ;;  %v756_v8 = vadd.f32 %v1689_v63, %v622_v62 }
 0x16a   :  { %v757_v0 = vadd.f32 %v1689_v63, %v623_v51  ;;  %v758_v5 = vadd.f32 %v1689_v63, %v624_v41  ;;  %881 = vst [vmem:[#allocation5 + $0x170] sm:$0xff] %v753_v48  ;;  %882 = vst [vmem:[#allocation5 + $0x178] sm:$0xff] %v754_v52  ;;  %v627_v9 = vmul.f32 %v1680_v55, %v1276_v18  ;;  %v2157_v51 = vld [vmem:[#allocation14_spill] sm:$0xff]  ;;  %v2158_v48 = vld [vmem:[#allocation15_spill] sm:$0xff] }
 0x16b   :  { %v759_v45 = vadd.f32 %v1689_v63, %v625_v58  ;;  %v760_v26 = vadd.f32 %v1689_v63, %v626_v56  ;;  %v628_v14 = vmul.f32 %v1680_v55, %v1281_v23  ;;  %883 = vst [vmem:[#allocation5 + $0x180] sm:$0xff] %v755_v60  ;;  %884 = vst [vmem:[#allocation5 + $0x188] sm:$0xff] %v756_v8  ;;  %v2159_v58 = vld [vmem:[#allocation16_spill] sm:$0xff]  ;;  %v2160_v60 = vld [vmem:[#allocation17_spill] sm:$0xff] }
 0x16c   :  { %885 = vst [vmem:[#allocation5 + $0x190] sm:$0xff] %v757_v0  ;;  %886 = vst [vmem:[#allocation5 + $0x198] sm:$0xff] %v758_v5  ;;  %v629_v10 = vmul.f32 %v1680_v55, %v1286_v27  ;;  %v630_v4 = vmul.f32 %v1680_v55, %v1291_v33  ;;  %v631_v6 = vmul.f32 %v1680_v55, %v1296_v38  ;;  %v2161_v0 = vld [vmem:[#allocation18_spill] sm:$0xff] }
 0x16d   :  { %v632_v30 = vmul.f32 %v1680_v55, %v1301_v43  ;;  %887 = vst [vmem:[#allocation5 + $0x1a0] sm:$0xff] %v759_v45  ;;  %888 = vst [vmem:[#allocation5 + $0x1a8] sm:$0xff] %v760_v26  ;;  %v761_v18 = vadd.f32 %v1689_v63, %v627_v9  ;;  %v762_v23 = vadd.f32 %v1689_v63, %v628_v14  ;;  %v2162_v45 = vld [vmem:[#allocation19_spill] sm:$0xff] }
 0x16e   :  { %v633_v42 = vmul.f32 %v1680_v55, %v1306_v49  ;;  %v634_v27 = vmul.f32 %v1680_v55, %v1311_v54  ;;  %v763_v33 = vadd.f32 %v1689_v63, %v629_v10  ;;  %v764_v57 = vadd.f32 %v1689_v63, %v630_v4  ;;  %v2163_v10 = vld [vmem:[#allocation20_spill] sm:$0xff] }
 0x16f   :  { %v765_v38 = vadd.f32 %v1689_v63, %v631_v6  ;;  %v766_v43 = vadd.f32 %v1689_v63, %v632_v30  ;;  %889 = vst [vmem:[#allocation5 + $0x1b0] sm:$0xff] %v761_v18  ;;  %890 = vst [vmem:[#allocation5 + $0x1b8] sm:$0xff] %v762_v23  ;;  %v635_v49 = vmul.f32 %v1680_v55, %v1316_v59  ;;  %v2164_v6 = vld [vmem:[#allocation21_spill] sm:$0xff] }
 0x170   :  { %v767_v12 = vadd.f32 %v1689_v63, %v633_v42  ;;  %v768_v15 = vadd.f32 %v1689_v63, %v634_v27  ;;  %v636_v54 = vmul.f32 %v1680_v55, %v1321_v1  ;;  %891 = vst [vmem:[#allocation5 + $0x1c0] sm:$0xff] %v763_v33  ;;  %892 = vst [vmem:[#allocation5 + $0x1c8] sm:$0xff] %v764_v57 }
 0x171   :  { %893 = vst [vmem:[#allocation5 + $0x1d0] sm:$0xff] %v765_v38  ;;  %894 = vst [vmem:[#allocation5 + $0x1d8] sm:$0xff] %v766_v43  ;;  %v637_v17 = vmul.f32 %v1680_v55, %v1326_v7  ;;  %v638_v47 = vmul.f32 %v1680_v55, %v1331_v13  ;;  %v639_v50 = vmul.f32 %v1680_v55, %v1336_v19  ;;  %v2165_v38 = vld [vmem:[#allocation22_spill] sm:$0xff] }
 0x172   :  { %v640_v34 = vmul.f32 %v1680_v55, %v1341_v25  ;;  %895 = vst [vmem:[#allocation5 + $0x1e0] sm:$0xff] %v767_v12  ;;  %896 = vst [vmem:[#allocation5 + $0x1e8] sm:$0xff] %v768_v15  ;;  %v769_v59 = vadd.f32 %v1689_v63, %v635_v49  ;;  %v770_v1 = vadd.f32 %v1689_v63, %v636_v54  ;;  %v2166_v12 = vld [vmem:[#allocation23_spill] sm:$0xff]  ;;  %v2167_v49 = vld [vmem:[#allocation24_spill] sm:$0xff] }
 0x173   :  { %v641_v20 = vmul.f32 %v1680_v55, %v1346_v31  ;;  %v642_v7 = vmul.f32 %v1680_v55, %v1351_v39  ;;  %v771_v13 = vadd.f32 %v1689_v63, %v637_v17  ;;  %v772_v16 = vadd.f32 %v1689_v63, %v638_v47  ;;  %v2168_v17 = vld [vmem:[#allocation25_spill] sm:$0xff] }
 0x174   :  { %v773_v19 = vadd.f32 %v1689_v63, %v639_v50  ;;  %v774_v25 = vadd.f32 %v1689_v63, %v640_v34  ;;  %897 = vst [vmem:[#allocation5 + $0x1f0] sm:$0xff] %v769_v59  ;;  %898 = vst [vmem:[#allocation5 + $0x1f8] sm:$0xff] %v770_v1  ;;  %v643_v31 = vmul.f32 %v1680_v55, %v1356_v46  ;;  %v2169_v50 = vld [vmem:[#allocation26_spill] sm:$0xff]  ;;  %v2170_v59 = vld [vmem:[#allocation27_spill] sm:$0xff] }
 0x175   :  { %v775_v37 = vadd.f32 %v1689_v63, %v641_v20  ;;  %v776_v22 = vadd.f32 %v1689_v63, %v642_v7  ;;  %v644_v39 = vmul.f32 %v1680_v55, %v1361_v53  ;;  %899 = vst [vmem:[#allocation5 + $0x200] sm:$0xff] %v771_v13  ;;  %900 = vst [vmem:[#allocation5 + $0x208] sm:$0xff] %v772_v16  ;;  %v2171_v13 = vld [vmem:[#allocation28_spill] sm:$0xff] }
 0x176   :  { %901 = vst [vmem:[#allocation5 + $0x210] sm:$0xff] %v773_v19  ;;  %902 = vst [vmem:[#allocation5 + $0x218] sm:$0xff] %v774_v25  ;;  %v645_v28 = vmul.f32 %v1680_v55, %v1366_v61  ;;  %v646_v29 = vmul.f32 %v1680_v55, %v1371_v3  ;;  %v647_v32 = vmul.f32 %v1680_v55, %v1376_v11  ;;  %v2172_v19 = vld [vmem:[#allocation29_spill] sm:$0xff] }
 0x177   :  { %v648_v36 = vmul.f32 %v1680_v55, %v1381_v21  ;;  %903 = vst [vmem:[#allocation5 + $0x220] sm:$0xff] %v775_v37  ;;  %904 = vst [vmem:[#allocation5 + $0x228] sm:$0xff] %v776_v22  ;;  %v777_v46 = vadd.f32 %v1689_v63, %v643_v31  ;;  %v778_v53 = vadd.f32 %v1689_v63, %v644_v39 }
 0x178   :  { %v649_v24 = vmul.f32 %v1680_v55, %v2155_v2  ;;  %v650_v61 = vmul.f32 %v1680_v55, %v2156_v40  ;;  %v779_v3 = vadd.f32 %v1689_v63, %v645_v28  ;;  %v780_v44 = vadd.f32 %v1689_v63, %v646_v29  ;;  %v2175_v2 = vld [vmem:[#allocation32_spill] sm:$0xff]  ;;  %v2176_v40 = vld [vmem:[#allocation33_spill] sm:$0xff] }
 0x179   :  { %v781_v11 = vadd.f32 %v1689_v63, %v647_v32  ;;  %v782_v21 = vadd.f32 %v1689_v63, %v648_v36  ;;  %905 = vst [vmem:[#allocation5 + $0x230] sm:$0xff] %v777_v46  ;;  %906 = vst [vmem:[#allocation5 + $0x238] sm:$0xff] %v778_v53  ;;  %v651_v41 = vmul.f32 %v1680_v55, %v2157_v51  ;;  %v2173_v32 = vld [vmem:[#allocation30_spill] sm:$0xff]  ;;  %v2174_v46 = vld [vmem:[#allocation31_spill] sm:$0xff] }
 0x17a   :  { %v783_v35 = vadd.f32 %v1689_v63, %v649_v24  ;;  %v784_v62 = vadd.f32 %v1689_v63, %v650_v61  ;;  %v652_v52 = vmul.f32 %v1680_v55, %v2158_v48  ;;  %907 = vst [vmem:[#allocation5 + $0x240] sm:$0xff] %v779_v3  ;;  %908 = vst [vmem:[#allocation5 + $0x248] sm:$0xff] %v780_v44  ;;  %v2177_v3 = vld [vmem:[#allocation34_spill] sm:$0xff]  ;;  %v2179_v51 = vld [vmem:[#allocation36_spill] sm:$0xff] }
 0x17b   :  { %909 = vst [vmem:[#allocation5 + $0x250] sm:$0xff] %v781_v11  ;;  %910 = vst [vmem:[#allocation5 + $0x258] sm:$0xff] %v782_v21  ;;  %v653_v56 = vmul.f32 %v1680_v55, %v2159_v58  ;;  %v654_v8 = vmul.f32 %v1680_v55, %v2160_v60  ;;  %v655_v5 = vmul.f32 %v1680_v55, %v2161_v0  ;;  %v2178_v11 = vld [vmem:[#allocation35_spill] sm:$0xff]  ;;  %v2180_v48 = vld [vmem:[#allocation37_spill] sm:$0xff] }
 0x17c   :  { %v656_v26 = vmul.f32 %v1680_v55, %v2162_v45  ;;  %911 = vst [vmem:[#allocation5 + $0x260] sm:$0xff] %v783_v35  ;;  %912 = vst [vmem:[#allocation5 + $0x268] sm:$0xff] %v784_v62  ;;  %v785_v9 = vadd.f32 %v1689_v63, %v651_v41  ;;  %v786_v14 = vadd.f32 %v1689_v63, %v652_v52  ;;  %v2181_v45 = vld [vmem:[#allocation38_spill] sm:$0xff] }
 0x17d   :  { %v657_v4 = vmul.f32 %v1680_v55, %v2163_v10  ;;  %v658_v30 = vmul.f32 %v1680_v55, %v2164_v6  ;;  %v787_v18 = vadd.f32 %v1689_v63, %v653_v56  ;;  %v788_v23 = vadd.f32 %v1689_v63, %v654_v8  ;;  %v2183_v10 = vld [vmem:[#allocation40_spill] sm:$0xff]  ;;  %v2184_v6 = vld [vmem:[#allocation41_spill] sm:$0xff] }
 0x17e   :  { %v789_v42 = vadd.f32 %v1689_v63, %v655_v5  ;;  %v790_v27 = vadd.f32 %v1689_v63, %v656_v26  ;;  %913 = vst [vmem:[#allocation5 + $0x270] sm:$0xff] %v785_v9  ;;  %914 = vst [vmem:[#allocation5 + $0x278] sm:$0xff] %v786_v14  ;;  %v659_v43 = vmul.f32 %v1680_v55, %v2165_v38  ;;  %v2182_v9 = vld [vmem:[#allocation39_spill] sm:$0xff]  ;;  %v2187_v38 = vld [vmem:[#allocation44_spill] sm:$0xff] }
 0x17f   :  { %v791_v33 = vadd.f32 %v1689_v63, %v657_v4  ;;  %v792_v57 = vadd.f32 %v1689_v63, %v658_v30  ;;  %v660_v15 = vmul.f32 %v1680_v55, %v2166_v12  ;;  %915 = vst [vmem:[#allocation5 + $0x280] sm:$0xff] %v787_v18  ;;  %916 = vst [vmem:[#allocation5 + $0x288] sm:$0xff] %v788_v23  ;;  %v2185_v18 = vld [vmem:[#allocation42_spill] sm:$0xff]  ;;  %v2188_v12 = vld [vmem:[#allocation45_spill] sm:$0xff] }
 0x180   :  { %917 = vst [vmem:[#allocation5 + $0x290] sm:$0xff] %v789_v42  ;;  %918 = vst [vmem:[#allocation5 + $0x298] sm:$0xff] %v790_v27  ;;  %v661_v54 = vmul.f32 %v1680_v55, %v2167_v49  ;;  %v662_v47 = vmul.f32 %v1680_v55, %v2168_v17  ;;  %v663_v34 = vmul.f32 %v1680_v55, %v2169_v50  ;;  %v2186_v42 = vld [vmem:[#allocation43_spill] sm:$0xff] }
 0x181   :  { %v664_v1 = vmul.f32 %v1680_v55, %v2170_v59  ;;  %919 = vst [vmem:[#allocation5 + $0x2a0] sm:$0xff] %v791_v33  ;;  %920 = vst [vmem:[#allocation5 + $0x2a8] sm:$0xff] %v792_v57  ;;  %v793_v20 = vadd.f32 %v1689_v63, %v659_v43  ;;  %v794_v7 = vadd.f32 %v1689_v63, %v660_v15  ;;  %v2189_v59 = vld [vmem:[#allocation46_spill] sm:$0xff] }
 0x182   :  { %v665_v16 = vmul.f32 %v1680_v55, %v2171_v13  ;;  %v666_v25 = vmul.f32 %v1680_v55, %v2172_v19  ;;  %v795_v37 = vadd.f32 %v1689_v63, %v661_v54  ;;  %v796_v22 = vadd.f32 %v1689_v63, %v662_v47  ;;  %v2191_v13 = vld [vmem:[#allocation48_spill] sm:$0xff]  ;;  %v2192_v19 = vld [vmem:[#allocation49_spill] sm:$0xff] }
 0x183   :  { %v797_v31 = vadd.f32 %v1689_v63, %v663_v34  ;;  %v798_v39 = vadd.f32 %v1689_v63, %v664_v1  ;;  %921 = vst [vmem:[#allocation5 + $0x2b0] sm:$0xff] %v793_v20  ;;  %922 = vst [vmem:[#allocation5 + $0x2b8] sm:$0xff] %v794_v7  ;;  %v667_v36 = vmul.f32 %v1680_v55, %v2173_v32  ;;  %v2190_v20 = vld [vmem:[#allocation47_spill] sm:$0xff]  ;;  %v2195_v32 = vld [vmem:[#allocation52_spill] sm:$0xff] }
 0x184   :  { %v799_v28 = vadd.f32 %v1689_v63, %v665_v16  ;;  %v800_v29 = vadd.f32 %v1689_v63, %v666_v25  ;;  %v668_v53 = vmul.f32 %v1680_v55, %v2174_v46  ;;  %923 = vst [vmem:[#allocation5 + $0x2c0] sm:$0xff] %v795_v37  ;;  %924 = vst [vmem:[#allocation5 + $0x2c8] sm:$0xff] %v796_v22  ;;  %v2193_v37 = vld [vmem:[#allocation50_spill] sm:$0xff]  ;;  %v2196_v46 = vld [vmem:[#allocation53_spill] sm:$0xff] }
 0x185   :  { %925 = vst [vmem:[#allocation5 + $0x2d0] sm:$0xff] %v797_v31  ;;  %926 = vst [vmem:[#allocation5 + $0x2d8] sm:$0xff] %v798_v39  ;;  %v669_v24 = vmul.f32 %v1680_v55, %v2175_v2  ;;  %v670_v61 = vmul.f32 %v1680_v55, %v2176_v40  ;;  %v671_v44 = vmul.f32 %v1680_v55, %v2177_v3  ;;  %v2194_v31 = vld [vmem:[#allocation51_spill] sm:$0xff] }
 0x186   :  { %v672_v21 = vmul.f32 %v1680_v55, %v2178_v11  ;;  %927 = vst [vmem:[#allocation5 + $0x2e0] sm:$0xff] %v799_v28  ;;  %928 = vst [vmem:[#allocation5 + $0x2e8] sm:$0xff] %v800_v29  ;;  %v801_v35 = vadd.f32 %v1689_v63, %v667_v36  ;;  %v802_v62 = vadd.f32 %v1689_v63, %v668_v53  ;;  %v2197_v11 = vld [vmem:[#allocation54_spill] sm:$0xff] }
 0x187   :  { %v673_v41 = vmul.f32 %v1680_v55, %v2179_v51  ;;  %v674_v52 = vmul.f32 %v1680_v55, %v2180_v48  ;;  %v803_v58 = vadd.f32 %v1689_v63, %v669_v24  ;;  %v804_v56 = vadd.f32 %v1689_v63, %v670_v61  ;;  %v2199_v51 = vld [vmem:[#allocation56_spill] sm:$0xff]  ;;  %v2200_v48 = vld [vmem:[#allocation57_spill] sm:$0xff] }
 0x188   :  { %v805_v60 = vadd.f32 %v1689_v63, %v671_v44  ;;  %v806_v8 = vadd.f32 %v1689_v63, %v672_v21  ;;  %929 = vst [vmem:[#allocation5 + $0x2f0] sm:$0xff] %v801_v35  ;;  %930 = vst [vmem:[#allocation5 + $0x2f8] sm:$0xff] %v802_v62  ;;  %v675_v26 = vmul.f32 %v1680_v55, %v2181_v45  ;;  %v2198_v35 = vld [vmem:[#allocation55_spill] sm:$0xff]  ;;  %v2203_v45 = vld [vmem:[#allocation60_spill] sm:$0xff] }
 0x189   :  { %v807_v0 = vadd.f32 %v1689_v63, %v673_v41  ;;  %v808_v5 = vadd.f32 %v1689_v63, %v674_v52  ;;  %v676_v14 = vmul.f32 %v1680_v55, %v2182_v9  ;;  %931 = vst [vmem:[#allocation5 + $0x300] sm:$0xff] %v803_v58  ;;  %932 = vst [vmem:[#allocation5 + $0x308] sm:$0xff] %v804_v56  ;;  %v2201_v58 = vld [vmem:[#allocation58_spill] sm:$0xff]  ;;  %v2204_v9 = vld [vmem:[#allocation61_spill] sm:$0xff] }
 0x18a   :  { %933 = vst [vmem:[#allocation5 + $0x310] sm:$0xff] %v805_v60  ;;  %934 = vst [vmem:[#allocation5 + $0x318] sm:$0xff] %v806_v8  ;;  %v677_v4 = vmul.f32 %v1680_v55, %v2183_v10  ;;  %v678_v30 = vmul.f32 %v1680_v55, %v2184_v6  ;;  %v679_v23 = vmul.f32 %v1680_v55, %v2185_v18  ;;  %v2202_v60 = vld [vmem:[#allocation59_spill] sm:$0xff] }
 0x18b   :  { %v680_v27 = vmul.f32 %v1680_v55, %v2186_v42  ;;  %935 = vst [vmem:[#allocation5 + $0x320] sm:$0xff] %v807_v0  ;;  %936 = vst [vmem:[#allocation5 + $0x328] sm:$0xff] %v808_v5  ;;  %v809_v33 = vadd.f32 %v1689_v63, %v675_v26  ;;  %v810_v57 = vadd.f32 %v1689_v63, %v676_v14  ;;  %v2205_v42 = vld [vmem:[#allocation62_spill] sm:$0xff] }
 0x18c   :  { %v681_v43 = vmul.f32 %v1680_v55, %v2187_v38  ;;  %v682_v15 = vmul.f32 %v1680_v55, %v2188_v12  ;;  %v811_v49 = vadd.f32 %v1689_v63, %v677_v4  ;;  %v812_v54 = vadd.f32 %v1689_v63, %v678_v30 }
 0x18d   :  { %v813_v17 = vadd.f32 %v1689_v63, %v679_v23  ;;  %v814_v47 = vadd.f32 %v1689_v63, %v680_v27  ;;  %937 = vst [vmem:[#allocation5 + $0x330] sm:$0xff] %v809_v33  ;;  %938 = vst [vmem:[#allocation5 + $0x338] sm:$0xff] %v810_v57  ;;  %v683_v1 = vmul.f32 %v1680_v55, %v2189_v59  ;;  %v2206_v33 = vld [vmem:[#allocation63_spill] sm:$0xff] }
 0x18e   :  { %v815_v50 = vadd.f32 %v1689_v63, %v681_v43  ;;  %v816_v34 = vadd.f32 %v1689_v63, %v682_v15  ;;  %v684_v7 = vmul.f32 %v1680_v55, %v2190_v20  ;;  %939 = vst [vmem:[#allocation5 + $0x340] sm:$0xff] %v811_v49  ;;  %940 = vst [vmem:[#allocation5 + $0x348] sm:$0xff] %v812_v54 }
 0x18f   :  { %941 = vst [vmem:[#allocation5 + $0x350] sm:$0xff] %v813_v17  ;;  %942 = vst [vmem:[#allocation5 + $0x358] sm:$0xff] %v814_v47  ;;  %v685_v16 = vmul.f32 %v1680_v55, %v2191_v13  ;;  %v686_v25 = vmul.f32 %v1680_v55, %v2192_v19  ;;  %v687_v22 = vmul.f32 %v1680_v55, %v2193_v37 }
 0x190   :  { %v688_v39 = vmul.f32 %v1680_v55, %v2194_v31  ;;  %943 = vst [vmem:[#allocation5 + $0x360] sm:$0xff] %v815_v50  ;;  %944 = vst [vmem:[#allocation5 + $0x368] sm:$0xff] %v816_v34  ;;  %v817_v28 = vadd.f32 %v1689_v63, %v683_v1  ;;  %v818_v29 = vadd.f32 %v1689_v63, %v684_v7 }
 0x191   :  { %v689_v36 = vmul.f32 %v1680_v55, %v2195_v32  ;;  %v690_v53 = vmul.f32 %v1680_v55, %v2196_v46  ;;  %v819_v2 = vadd.f32 %v1689_v63, %v685_v16  ;;  %v820_v24 = vadd.f32 %v1689_v63, %v686_v25 }
 0x192   :  { %v821_v40 = vadd.f32 %v1689_v63, %v687_v22  ;;  %v822_v61 = vadd.f32 %v1689_v63, %v688_v39  ;;  %945 = vst [vmem:[#allocation5 + $0x370] sm:$0xff] %v817_v28  ;;  %946 = vst [vmem:[#allocation5 + $0x378] sm:$0xff] %v818_v29  ;;  %v691_v21 = vmul.f32 %v1680_v55, %v2197_v11 }
 0x193   :  { %v823_v3 = vadd.f32 %v1689_v63, %v689_v36  ;;  %v824_v44 = vadd.f32 %v1689_v63, %v690_v53  ;;  %v692_v62 = vmul.f32 %v1680_v55, %v2198_v35  ;;  %947 = vst [vmem:[#allocation5 + $0x380] sm:$0xff] %v819_v2  ;;  %948 = vst [vmem:[#allocation5 + $0x388] sm:$0xff] %v820_v24 }
 0x194   :  { %949 = vst [vmem:[#allocation5 + $0x390] sm:$0xff] %v821_v40  ;;  %950 = vst [vmem:[#allocation5 + $0x398] sm:$0xff] %v822_v61  ;;  %v693_v41 = vmul.f32 %v1680_v55, %v2199_v51  ;;  %v694_v52 = vmul.f32 %v1680_v55, %v2200_v48  ;;  %v695_v56 = vmul.f32 %v1680_v55, %v2201_v58 }
 0x195   :  { %v696_v8 = vmul.f32 %v1680_v55, %v2202_v60  ;;  %951 = vst [vmem:[#allocation5 + $0x3a0] sm:$0xff] %v823_v3  ;;  %952 = vst [vmem:[#allocation5 + $0x3a8] sm:$0xff] %v824_v44  ;;  %v825_v0 = vadd.f32 %v1689_v63, %v691_v21  ;;  %v826_v5 = vadd.f32 %v1689_v63, %v692_v62 }
 0x196   :  { %v697_v26 = vmul.f32 %v1680_v55, %v2203_v45  ;;  %v698_v14 = vmul.f32 %v1680_v55, %v2204_v9  ;;  %v827_v10 = vadd.f32 %v1689_v63, %v693_v41  ;;  %v828_v4 = vadd.f32 %v1689_v63, %v694_v52 }
 0x197   :  { %v829_v6 = vadd.f32 %v1689_v63, %v695_v56  ;;  %v830_v30 = vadd.f32 %v1689_v63, %v696_v8  ;;  %953 = vst [vmem:[#allocation5 + $0x3b0] sm:$0xff] %v825_v0  ;;  %954 = vst [vmem:[#allocation5 + $0x3b8] sm:$0xff] %v826_v5  ;;  %v699_v27 = vmul.f32 %v1680_v55, %v2205_v42 }
 0x198   :  { %v831_v18 = vadd.f32 %v1689_v63, %v697_v26  ;;  %v832_v23 = vadd.f32 %v1689_v63, %v698_v14  ;;  %v700_v57 = vmul.f32 %v1680_v55, %v2206_v33  ;;  %955 = vst [vmem:[#allocation5 + $0x3c0] sm:$0xff] %v827_v10  ;;  %956 = vst [vmem:[#allocation5 + $0x3c8] sm:$0xff] %v828_v4 }
 0x199   :  { %957 = vst [vmem:[#allocation5 + $0x3d0] sm:$0xff] %v829_v6  ;;  %958 = vst [vmem:[#allocation5 + $0x3d8] sm:$0xff] %v830_v30  ;;  %v833_v38 = vadd.f32 %v1689_v63, %v699_v27 }
 0x19a   :  { %959 = vst [vmem:[#allocation5 + $0x3e0] sm:$0xff] %v831_v18  ;;  %960 = vst [vmem:[#allocation5 + $0x3e8] sm:$0xff] %v832_v23  ;;  %v834_v43 = vadd.f32 %v1689_v63, %v700_v57 }
 0x19b   :  { %961 = vst [vmem:[#allocation5 + $0x3f0] sm:$0xff] %v833_v38 }
 0x19c   :  { %962 = vst [vmem:[#allocation5 + $0x3f8] sm:$0xff] %v834_v43 }
 0x19d   :  { %1132 = shalt.err (!%p1129_p0)
}
 0x19e   :  { %s1133_s13 = scalar_lea.hbm %s2048_s3, 16384 }
 0x19f   :  { %p1134_p1 = scmp.ne.s32.totalorder %s2048_s3, %s1133_s13  ;;  %p1137_p2 = scmp.lt.u32.totalorder %s1133_s13, %s2048_s3 }
 0x1a1   :  { %p1139_p3 = pnand %p1137_p2, %p1134_p1 }
 0x1a3   :  { %1142 = shalt.err (!%p1139_p3)
}
 0x1a4   :  { %976 = dma.vmem_to_hbm [thread:$0]  %s971_s2, 16384, %s2048_s3, [#allocation4], %s1150_s28, %s1150_s28, %s1151_s29  }
 0x1a5   :  { %1145 = dma.done.wait [#allocation4], 16384  }
 0x1a6   :  { %1146 = vsyncadd [#allocation4], 4294950912 }
 0x1a7   :  { %1147 = dma.done.wait [#allocation7], 32  }
 0x1a8   :  { %1148 = vsyncadd [#allocation7], 4294967264 }
 0x1a9   :  { %1006 = vsyncpa [#allocation3], 1 }
 0x1aa   :  { %1007 = vsyncpa [#allocation4], 1 }
 0x1ab   :  { %1008 = vsyncpa [#allocation7], 1 }

</bundles_post_ra>
